<compile_context>
chip_gen: v6e
topology: v6e:2x2x1
jax: 0.10.0
libtpu: 0.0.40
codegen_flags: <defaults>
</compile_context>

<pallas_src>
import functools

import jax
import jax.numpy as jnp
from jax.experimental import pallas as pl
from jax.experimental.pallas import tpu as pltpu


def _mul_conv1x1_kernel(x_ref, s_ref, w_ref, o_ref):
    # x_ref: (Cin, HW)        f32   activations (free NCHW batch-1 view)
    # s_ref: (1, Cin)         f32   per-channel scale, lane-dense row
    # w_ref: (Cout_blk, Cin)  bf16  1x1-conv weight block (pre-cast offline)
    # o_ref: (Cout_blk, HW)   f32
    #
    # Apply the channel scale to the weight rows (diag(s) commutes with the
    # matmul): broadcast of the (1, Cin) row over sublanes is fully lane-dense,
    # done on the VPU in f32, then a single bf16 cast feeds the MXU.
    ws = (w_ref[...] * s_ref[...]).astype(jnp.bfloat16)          # (Cout_blk, Cin)
    xb = x_ref[...].astype(jnp.bfloat16)                          # (Cin, HW)
    o_ref[...] = jnp.dot(
        ws, xb, preferred_element_type=jnp.float32
    ).astype(o_ref.dtype)                                         # (Cout_blk, HW)


def _num_tensorcores() -> int:
    """2 on v7x (two TensorCores per chip), else 1."""
    try:
        kind = jax.devices()[0].device_kind.lower()
    except Exception:
        return 1
    return 2 if ("v7" in kind or "7x" in kind) else 1


_COUT_BLOCKS = _num_tensorcores()


def prepare_conv_weight(weight_oi11):
    """(Cout, Cin, 1, 1) f32 -> (Cout, Cin) bf16.

    Pure reshape + one-time cast; the weight is static at inference, so no
    per-call relayout of the ~1 MB f32 weight is needed.
    """
    cout, cin = weight_oi11.shape[0], weight_oi11.shape[1]
    return weight_oi11.reshape(cout, cin).astype(jnp.bfloat16)


@functools.partial(jax.jit, static_argnames=("cout_blocks",))
def mul_conv1x1(x_nchw, scale_nc11, w2d_bf16, *, cout_blocks=_COUT_BLOCKS):
    """x_nchw: (1, Cin, H, W); scale_nc11: (1, Cin, 1, 1); w2d_bf16: (Cout, Cin) bf16."""
    N, Cin, H, W = x_nchw.shape
    Cout = w2d_bf16.shape[0]
    assert N == 1, "kernel assumes batch 1 (as in the reference module)"
    M = H * W

    x2d = x_nchw.reshape(Cin, M)         # free reshape, no transpose
    s2d = scale_nc11.reshape(1, Cin)     # free reshape, lane-dense row

    cost = pl.CostEstimate(
        flops=2 * Cout * Cin * M + Cout * Cin,
        transcendentals=0,
        bytes_accessed=(Cin * M * 4) + (Cin * 4) + (Cout * Cin * 2) + (Cout * M * 4),
    )
    out_shape = jax.ShapeDtypeStruct((Cout, M), x_nchw.dtype)

    if cout_blocks <= 1:
        # Single TensorCore (v5e / v6e): grid-less call, whole arrays in VMEM.
        vmem = pltpu.MemorySpace.VMEM
        out2d = pl.pallas_call(
            _mul_conv1x1_kernel,
            out_shape=out_shape,
            in_specs=[
                pl.BlockSpec(memory_space=vmem),   # activations (Cin, HW)
                pl.BlockSpec(memory_space=vmem),   # scale row   (1, Cin)
                pl.BlockSpec(memory_space=vmem),   # weight      (Cout, Cin) bf16
            ],
            out_specs=pl.BlockSpec(memory_space=vmem),
            cost_estimate=cost,
        )(x2d, s2d, w2d_bf16)
    else:
        # v7x: shard Cout across the two TensorCores ("parallel" grid axis);
        # each core DMAs only its half of the weight. X/scale index_maps are
        # constant, so they are not re-fetched per step.
        assert Cout % cout_blocks == 0
        cb = Cout // cout_blocks
        out2d = pl.pallas_call(
            _mul_conv1x1_kernel,
            out_shape=out_shape,
            grid=(cout_blocks,),
            in_specs=[
                pl.BlockSpec((Cin, M), lambda i: (0, 0)),
                pl.BlockSpec((1, Cin), lambda i: (0, 0)),
                pl.BlockSpec((cb, Cin), lambda i: (i, 0)),
            ],
            out_specs=pl.BlockSpec((cb, M), lambda i: (i, 0)),
            compiler_params=pltpu.CompilerParams(
                dimension_semantics=("parallel",),
            ),
            cost_estimate=cost,
        )(x2d, s2d, w2d_bf16)

    return out2d.reshape(N, Cout, H, W)   # free reshape back to NCHW


if __name__ == "__main__":
    key = jax.random.PRNGKey(0)
    k1, k2, k3 = jax.random.split(key, 3)

    # Shapes implied by the module's forward pass.
    N, Cin, H, W = 1, 1248, 7, 7
    Cout = 208

    x279 = jax.random.normal(k1, (N, Cin, H, W), dtype=jnp.float32)   # feature map
    x284 = jax.random.normal(k2, (N, Cin, 1, 1), dtype=jnp.float32)   # per-channel scale
    # Conv2d(1248, 208, kernel_size=1, bias=False) weight
    weight = jax.random.normal(k3, (Cout, Cin, 1, 1), dtype=jnp.float32) * 0.02

    w2d = prepare_conv_weight(weight)              # one-time relayout + bf16 cast
    out = jax.block_until_ready(mul_conv1x1(x279, x284, w2d))
    assert out.shape == (N, Cout, H, W)

    # Tight check against a reference with matching bf16 operand rounding
    # (kernel applies the scale to the bf16 weight in f32, re-rounds to bf16,
    #  and multiplies by bf16-rounded activations; accumulation in f32).
    s_row = x284.reshape(1, Cin)
    ws_match = (w2d.astype(jnp.float32) * s_row).astype(jnp.bfloat16).astype(jnp.float32)
    x_match = x279.reshape(Cin, H * W).astype(jnp.bfloat16).astype(jnp.float32)
    ref_tight = (ws_match @ x_match).reshape(N, Cout, H, W)
    assert jnp.allclose(out, ref_tight, atol=1e-2, rtol=1e-2)

    # Loose check against the exact f32 module math (differs only by bf16 rounding).
    ref_f32 = jnp.einsum("oc,nchw->nohw", weight.reshape(Cout, Cin), x284 * x279,
                         preferred_element_type=jnp.float32)
    assert jnp.allclose(out, ref_f32, atol=1e-1, rtol=1e-1)

    print("KERNEL_OK")
</pallas_src>

<mosaic_0001>
module attributes {stable_mosaic.version = 11 : i64} {
  func.func @_mul_conv1x1_kernel(%arg0: memref<1248x49xf32, #tpu.memory_space<vmem>>, %arg1: memref<1x1248xf32, #tpu.memory_space<vmem>>, %arg2: memref<208x1248xbf16, #tpu.memory_space<vmem>>, %arg3: memref<208x49xf32, #tpu.memory_space<vmem>>) attributes {dimension_semantics = [], scalar_prefetch = 0 : i64, scratch_operands = 0 : i64, tpu.core_type = #tpu.core_type<tc>} {
    %c0 = arith.constant 0 : index
    %c0_0 = arith.constant 0 : index
    %0 = vector.load %arg2[%c0, %c0_0] : memref<208x1248xbf16, #tpu.memory_space<vmem>>, vector<208x1248xbf16>
    %c0_1 = arith.constant 0 : index
    %c0_2 = arith.constant 0 : index
    %1 = vector.load %arg1[%c0_1, %c0_2] : memref<1x1248xf32, #tpu.memory_space<vmem>>, vector<1x1248xf32>
    %2 = arith.extf %0 : vector<208x1248xbf16> to vector<208x1248xf32>
    %3 = vector.broadcast %1 : vector<1x1248xf32> to vector<208x1248xf32>
    %4 = arith.mulf %2, %3 : vector<208x1248xf32>
    %5 = arith.truncf %4 : vector<208x1248xf32> to vector<208x1248xbf16>
    %c0_3 = arith.constant 0 : index
    %c0_4 = arith.constant 0 : index
    %6 = vector.load %arg0[%c0_3, %c0_4] : memref<1248x49xf32, #tpu.memory_space<vmem>>, vector<1248x49xf32>
    %7 = arith.truncf %6 : vector<1248x49xf32> to vector<1248x49xbf16>
    %cst = arith.constant dense<0.000000e+00> : vector<208x49xf32>
    %8 = tpu.matmul %5, %7, %cst {dimension_numbers = #tpu.dot_dimension_numbers<[1], [0], [0], [1], [0, 0, 1, 1], [], []>} : vector<208x1248xbf16>, vector<1248x49xbf16>, vector<208x49xf32> -> vector<208x49xf32>
    %c0_5 = arith.constant 0 : index
    %c0_6 = arith.constant 0 : index
    %9 = vector.load %arg3[%c0_5, %c0_6] : memref<208x49xf32, #tpu.memory_space<vmem>>, vector<208x49xf32>
    tpu.vector_store %arg3[%c0_5, %c0_6], %8 {strides = array<i32>} : memref<208x49xf32, #tpu.memory_space<vmem>>, vector<208x49xf32>,
    return
  }
}

</mosaic_0001>

<bundles_post_ra>
// kernel: mul_conv1x1.1
= control target key start
LH: loop header
LB: loop body
LE: loop exit
PB: predicated region body
PF: predicated region fallthrough
CT: control target
= control target key end

     0   :  { %v409_v3 = vlaneseq  ;;  %vm1083_vm0 = vcmask 785408   ;;  %vm1808_vm1 = vcmask 400384   ;;  %s4054_s0 = inlined_call_operand.vmem [shape: f32[1248,49], index: 0, kind: input, shape index: {}]   ;;  %s4055_s2 = inlined_call_operand.vmem [shape: bf16[208,1248], index: 2, kind: input, shape index: {}]   ;;  %s4056_s1 = inlined_call_operand.vmem [shape: f32[1,1248], index: 1, kind: input, shape index: {}]   ;;  %s4057_s3 = inlined_call_operand.vmem [shape: f32[208,49], index: 3, kind: output, shape index: {}]  }
   0x1   :  { %v879_v0 = vld [vmem:[%s4054_s0 + $0xf0] sm:$0xff]  ;;  %v880_v1 = vld [vmem:[%s4054_s0 + $0xf8] sm:$0xff]  ;;  %v877_v6 = vld [vmem:[%s4054_s0 + $0xe0] sm:$0xff] }
   0x2   :  { %v863_v2 = vld [vmem:[%s4054_s0 + $0x70] sm:$0xff]  ;;  %v1020_v4 = vpack.c.bf16 %v880_v1, %v879_v0  ;;  %v864_v5 = vld [vmem:[%s4054_s0 + $0x78] sm:$0xff]  ;;  %v878_v7 = vld [vmem:[%s4054_s0 + $0xe8] sm:$0xff]  ;;  %v2297_v15 = vshrl.u32 %v409_v3, 7 }
   0x3   :  { %v1012_v8 = vpack.c.bf16 %v864_v5, %v863_v2  ;;  %v1019_v9 = vpack.c.bf16 %v878_v7, %v877_v6  ;;  %v861_v10 = vld [vmem:[%s4054_s0 + $0x60] sm:$0xff]  ;;  %v862_v11 = vld [vmem:[%s4054_s0 + $0x68] sm:$0xff]  ;;  %v875_v12 = vld [vmem:[%s4054_s0 + $0xd0] sm:$0xff] }
   0x4   :  { %1852 = vmatprep.subr.bf16.mxu0 %v1020_v4  ;;  %2228 = vmatprep.subr.bf16.mxu1 %v1020_v4  ;;  %v876_v13 = vld [vmem:[%s4054_s0 + $0xd8] sm:$0xff]  ;;  %v1011_v14 = vpack.c.bf16 %v862_v11, %v861_v10  ;;  %v859_v17 = vld [vmem:[%s4054_s0 + $0x50] sm:$0xff]  ;;  %v873_v19 = vld [vmem:[%s4054_s0 + $0xc0] sm:$0xff]  ;;  %v415_v22 = vsub.s32 1, %v2297_v15  ;;  %v411_v29 = vsub.s32 0, %v2297_v15 }
   0x5   :  { %1853 = vmatpush3.bf16.msra.mxu0 %v1012_v8  ;;  %2236 = vmatpush3.bf16.msra.mxu1 %v1012_v8  ;;  %v1018_v16 = vpack.c.bf16 %v876_v13, %v875_v12  ;;  %v860_v18 = vld [vmem:[%s4054_s0 + $0x58] sm:$0xff]  ;;  %v874_v20 = vld [vmem:[%s4054_s0 + $0xc8] sm:$0xff]  ;;  %v857_v24 = vld [vmem:[%s4054_s0 + $0x40] sm:$0xff] }
   0x6   :  { %1854 = vmatprep.subr.bf16.mxu0 %v1019_v9  ;;  %2229 = vmatprep.subr.bf16.mxu1 %v1019_v9  ;;  %v1010_v21 = vpack.c.bf16 %v860_v18, %v859_v17  ;;  %v1017_v23 = vpack.c.bf16 %v874_v20, %v873_v19  ;;  %v858_v25 = vld [vmem:[%s4054_s0 + $0x48] sm:$0xff]  ;;  %v871_v26 = vld [vmem:[%s4054_s0 + $0xb0] sm:$0xff]  ;;  %v872_v27 = vld [vmem:[%s4054_s0 + $0xb8] sm:$0xff] }
   0x7   :  { %v2327_v28 = vld [vmem:[%s4055_s2] sm:$0xff]  ;;  %v2333_v30 = vld [vmem:[%s4055_s2 + $0x28] sm:$0xff]  ;;  %v1009_v34 = vpack.c.bf16 %v858_v25, %v857_v24  ;;  %v2353_v38 = vld [vmem:[%s4055_s2 + $0x230] sm:$0xff]  ;;  %v1016_v40 = vpack.c.bf16 %v872_v27, %v871_v26 }
   0x8   :  { %v2338_v31 = vld [vmem:[%s4056_s1] sm:$0xff]  ;;  %v146_v32 = vld [vmem:[%s4056_s1 + $0x8] sm:$0x3]  ;;  %v148_v33 = vunpack.c.h.bf16 %v2327_v28  ;;  %v158_v35 = vunpack.c.h.bf16 %v2333_v30  ;;  %v2358_v39 = vld [vmem:[%s4055_s2 + $0x258] sm:$0xff]  ;;  %v288_v44 = vunpack.c.h.bf16 %v2353_v38  ;;  %v147_v3 = vunpack.c.l.bf16 %v2327_v28 }
   0x9   :  { %1855 = vmatpush3.bf16.msra.mxu0 %v1011_v14  ;;  %2237 = vmatpush3.bf16.msra.mxu1 %v1011_v14  ;;  %v2346_v36 = vrot.slane %v2338_v31, %v415_v22  ;;  %v2348_v37 = vrot.slane %v146_v32, %v411_v29  ;;  %v855_v41 = vld [vmem:[%s4054_s0 + $0x30] sm:$0xff]  ;;  %v856_v42 = vld [vmem:[%s4054_s0 + $0x38] sm:$0xff]  ;;  %v2366_v43 = vrot.slane %v146_v32, %v415_v22  ;;  %v869_v45 = vld [vmem:[%s4054_s0 + $0xa0] sm:$0xff]  ;;  %v298_v49 = vunpack.c.h.bf16 %v2358_v39 }
   0xa   :  { %1856 = vmatprep.subr.bf16.mxu0 %v1018_v16  ;;  %2230 = vmatprep.subr.bf16.mxu1 %v1018_v16  ;;  %v870_v46 = vld [vmem:[%s4054_s0 + $0xa8] sm:$0xff]  ;;  %v1008_v51 = vpack.c.bf16 %v856_v42, %v855_v41  ;;  %v853_v55 = vld [vmem:[%s4054_s0 + $0x20] sm:$0xff]  ;;  %v867_v57 = vld [vmem:[%s4054_s0 + $0x90] sm:$0xff]  ;;  %v157_v4 = vunpack.c.l.bf16 %v2333_v30  ;;  %v2412_v5 = vrot.slane %v2338_v31, %v411_v29  ;;  %v287_v9 = vunpack.c.l.bf16 %v2353_v38 }
   0xb   :  { %v460_v47 = vmul.f32 %v2346_v36, %v148_v33  ;;  %v470_v48 = vmul.f32 %v2346_v36, %v158_v35  ;;  %v600_v50 = vmul.f32 %v2346_v36, %v288_v44  ;;  %v610_v53 = vmul.f32 %v2346_v36, %v298_v49  ;;  %v854_v56 = vld [vmem:[%s4054_s0 + $0x28] sm:$0xff]  ;;  %v868_v58 = vld [vmem:[%s4054_s0 + $0x98] sm:$0xff]  ;;  %v851_v61 = vld [vmem:[%s4054_s0 + $0x10] sm:$0xff] }
   0xc   :  { %v1015_v54 = vpack.c.bf16 %v870_v46, %v869_v45  ;;  %v1007_v60 = vpack.c.bf16 %v854_v56, %v853_v55  ;;  %v852_v62 = vld [vmem:[%s4054_s0 + $0x18] sm:$0xff]  ;;  %v1014_v63 = vpack.c.bf16 %v868_v58, %v867_v57  ;;  %v865_v0 = vld [vmem:[%s4054_s0 + $0x80] sm:$0xff]  ;;  %v866_v1 = vld [vmem:[%s4054_s0 + $0x88] sm:$0xff]  ;;  %v297_v10 = vunpack.c.l.bf16 %v2358_v39 }
   0xd   :  { %1857 = vmatpush3.bf16.msra.mxu0 %v1010_v21  ;;  %2238 = vmatpush3.bf16.msra.mxu1 %v1010_v21  ;;  %v720_v52 = vpack.c.bf16 %v470_v48, %v460_v47  ;;  %v790_v59 = vpack.c.bf16 %v610_v53, %v600_v50  ;;  %v2407_v2 = vld [vmem:[%s4055_s2 + $0x50] sm:$0xff]  ;;  %v2417_v6 = vld [vmem:[%s4055_s2 + $0x78] sm:$0xff]  ;;  %v2422_v7 = vld [vmem:[%s4055_s2 + $0x280] sm:$0xff]  ;;  %v1006_v11 = vpack.c.bf16 %v852_v62, %v851_v61 }
   0xe   :  { %1858 = vmatprep.subr.bf16.mxu0 %v1017_v23  ;;  %2231 = vmatprep.subr.bf16.mxu1 %v1017_v23  ;;  %v2427_v8 = vld [vmem:[%s4055_s2 + $0x2a8] sm:$0xff]  ;;  %v849_v12 = vld [vmem:[%s4054_s0] sm:$0xff]  ;;  %v943_v14 = vld [vmem:[%s4054_s0 + $0x2f0] sm:$0xff]  ;;  %v168_v16 = vunpack.c.h.bf16 %v2407_v2  ;;  %v1013_v17 = vpack.c.bf16 %v866_v1, %v865_v0  ;;  %v178_v21 = vunpack.c.h.bf16 %v2417_v6  ;;  %v308_v22 = vunpack.c.h.bf16 %v2422_v7 }
   0xf   :  { %1155 = vmatprep.mubr.bf16.mxu0 %v720_v52  ;;  %1211 = vmatprep.mubr.bf16.mxu1 %v790_v59  ;;  %v850_v13 = vld [vmem:[%s4054_s0 + $0x8] sm:$0xff]  ;;  %v944_v18 = vld [vmem:[%s4054_s0 + $0x2f8] sm:$0xff]  ;;  %v911_v19 = vld [vmem:[%s4054_s0 + $0x1f0] sm:$0xff]  ;;  %v318_v23 = vunpack.c.h.bf16 %v2427_v8  ;;  %v459_v24 = vmul.f32 %v2412_v5, %v147_v3  ;;  %v469_v25 = vmul.f32 %v2412_v5, %v157_v4  ;;  %v599_v28 = vmul.f32 %v2412_v5, %v287_v9 }
  0x10   :  { %v912_v20 = vld [vmem:[%s4054_s0 + $0x1f8] sm:$0xff]  ;;  %v927_v26 = vld [vmem:[%s4054_s0 + $0x270] sm:$0xff]  ;;  %v1005_v27 = vpack.c.bf16 %v850_v13, %v849_v12  ;;  %v609_v29 = vmul.f32 %v2412_v5, %v297_v10  ;;  %v480_v38 = vmul.f32 %v2346_v36, %v168_v16  ;;  %v2473_v39 = vld [vmem:[%s4054_s0 + $0x2e0] sm:$0xff]  ;;  %v490_v42 = vmul.f32 %v2346_v36, %v178_v21 }
  0x11   :  { %1859 = vmatpush3.bf16.msra.mxu0 %v1009_v34  ;;  %2239 = vmatpush3.bf16.msra.mxu1 %v1009_v34  ;;  %v928_v30 = vld [vmem:[%s4054_s0 + $0x278] sm:$0xff]  ;;  %v895_v32 = vld [vmem:[%s4054_s0 + $0x170] sm:$0xff]  ;;  %v1052_v34 = vpack.c.bf16 %v944_v18, %v943_v14  ;;  %v1036_v35 = vpack.c.bf16 %v912_v20, %v911_v19  ;;  %v2483_v41 = vld [vmem:[%s4055_s2 + $0xc8] sm:$0xff]  ;;  %v620_v44 = vmul.f32 %v2346_v36, %v308_v22  ;;  %v167_v47 = vunpack.c.l.bf16 %v2407_v2 }
  0x12   :  { %1860 = vmatprep.subr.bf16.mxu0 %v1016_v40  ;;  %2232 = vmatprep.subr.bf16.mxu1 %v1016_v40  ;;  %v896_v33 = vld [vmem:[%s4054_s0 + $0x178] sm:$0xff]  ;;  %v2478_v40 = vld [vmem:[%s4055_s2 + $0xa0] sm:$0xff]  ;;  %v630_v45 = vmul.f32 %v2346_v36, %v318_v23  ;;  %v942_v46 = vld [vmem:[%s4054_s0 + $0x2e8] sm:$0xff]  ;;  %v719_v50 = vpack.c.bf16 %v469_v25, %v459_v24  ;;  %v177_v52 = vunpack.c.l.bf16 %v2417_v6  ;;  %v307_v53 = vunpack.c.l.bf16 %v2422_v7 }
  0x13   :  { %v2495_v48 = vld [vmem:[%s4055_s2 + $0x2d0] sm:$0xff]  ;;  %v2500_v49 = vld [vmem:[%s4055_s2 + $0x2f8] sm:$0xff]  ;;  %v789_v55 = vpack.c.bf16 %v609_v29, %v599_v28  ;;  %v317_v56 = vunpack.c.l.bf16 %v2427_v8  ;;  %v910_v57 = vld [vmem:[%s4054_s0 + $0x1e8] sm:$0xff]  ;;  %v198_v61 = vunpack.c.h.bf16 %v2483_v41  ;;  %v1028_v62 = vpack.c.bf16 %v896_v33, %v895_v32 }
  0x14   :  { %v925_v58 = vld [vmem:[%s4054_s0 + $0x260] sm:$0xff]  ;;  %v926_v59 = vld [vmem:[%s4054_s0 + $0x268] sm:$0xff]  ;;  %v328_v0 = vunpack.c.h.bf16 %v2495_v48  ;;  %v338_v1 = vunpack.c.h.bf16 %v2500_v49  ;;  %v730_v2 = vpack.c.bf16 %v490_v42, %v480_v38  ;;  %v800_v3 = vpack.c.bf16 %v630_v45, %v620_v44  ;;  %v907_v8 = vld [vmem:[%s4054_s0 + $0x1d0] sm:$0xff] }
  0x15   :  { %1861 = vmatpush3.bf16.msra.mxu0 %v1008_v51  ;;  %2240 = vmatpush3.bf16.msra.mxu1 %v1008_v51  ;;  %v1044_v51 = vpack.c.bf16 %v928_v30, %v927_v26  ;;  %v2523_v4 = vmul.f32 %v2412_v5, %v167_v47  ;;  %v893_v6 = vld [vmem:[%s4054_s0 + $0x160] sm:$0xff]  ;;  %v894_v7 = vld [vmem:[%s4054_s0 + $0x168] sm:$0xff]  ;;  %v2535_v9 = vmul.f32 %v2412_v5, %v177_v52  ;;  %v908_v13 = vld [vmem:[%s4054_s0 + $0x1d8] sm:$0xff]  ;;  %v187_v28 = vunpack.c.l.bf16 %v2478_v40 }
  0x16   :  { %1862 = vmatprep.subr.bf16.mxu0 %v1015_v54  ;;  %2233 = vmatprep.subr.bf16.mxu1 %v1015_v54  ;;  %v909_v54 = vld [vmem:[%s4054_s0 + $0x1e0] sm:$0xff]  ;;  %v2538_v10 = vmul.f32 %v2412_v5, %v307_v53  ;;  %v1043_v12 = vpack.c.bf16 %v926_v59, %v925_v58  ;;  %v939_v14 = vld [vmem:[%s4054_s0 + $0x2d0] sm:$0xff]  ;;  %v940_v16 = vld [vmem:[%s4054_s0 + $0x2d8] sm:$0xff]  ;;  %v510_v19 = vmul.f32 %v2346_v36, %v198_v61  ;;  %v197_v29 = vunpack.c.l.bf16 %v2483_v41 }
  0x17   :  { %v1027_v20 = vpack.c.bf16 %v894_v7, %v893_v6  ;;  %v640_v21 = vmul.f32 %v2346_v36, %v328_v0  ;;  %v650_v22 = vmul.f32 %v2346_v36, %v338_v1  ;;  %v2557_v23 = vld [vmem:[%s4054_s0 + $0x150] sm:$0xff]  ;;  %v892_v24 = vld [vmem:[%s4054_s0 + $0x158] sm:$0xff]  ;;  %v1034_v26 = vpack.c.bf16 %v908_v13, %v907_v8  ;;  %v2577_v32 = vld [vmem:[%s4055_s2 + $0x320] sm:$0xff] }
  0x18   :  { %v2565_v25 = vld [vmem:[%s4055_s2 + $0xf0] sm:$0xff]  ;;  %v2572_v30 = vld [vmem:[%s4055_s2 + $0x118] sm:$0xff]  ;;  %v2582_v33 = vld [vmem:[%s4055_s2 + $0x348] sm:$0xff]  ;;  %v1026_v45 = vpack.c.bf16 %v892_v24, %v2557_v23  ;;  %v348_v52 = vunpack.c.h.bf16 %v2577_v32 }
  0x19   :  { %1863 = vmatpush3.bf16.msra.mxu0 %v1007_v60  ;;  %2241 = vmatpush3.bf16.msra.mxu1 %v1007_v60  ;;  %v188_v60 = vunpack.c.h.bf16 %v2478_v40  ;;  %v924_v38 = vld [vmem:[%s4054_s0 + $0x258] sm:$0xff]  ;;  %v337_v40 = vunpack.c.l.bf16 %v2500_v49  ;;  %v905_v41 = vld [vmem:[%s4054_s0 + $0x1c0] sm:$0xff]  ;;  %v208_v49 = vunpack.c.h.bf16 %v2565_v25  ;;  %v358_v53 = vunpack.c.h.bf16 %v2582_v33  ;;  %v890_v58 = vld [vmem:[%s4054_s0 + $0x148] sm:$0xff] }
  0x1a   :  { %1864 = vmatprep.subr.bf16.mxu0 %v1014_v63  ;;  %2234 = vmatprep.subr.bf16.mxu1 %v1014_v63  ;;  %v1051_v63 = vpack.c.bf16 %v942_v46, %v2473_v39  ;;  %v327_v39 = vunpack.c.l.bf16 %v2495_v48  ;;  %v906_v46 = vld [vmem:[%s4054_s0 + $0x1c8] sm:$0xff]  ;;  %v937_v47 = vld [vmem:[%s4054_s0 + $0x2c0] sm:$0xff]  ;;  %v903_v1 = vld [vmem:[%s4054_s0 + $0x1b0] sm:$0xff]  ;;  %v357_v24 = vunpack.c.l.bf16 %v2582_v33 }
  0x1b   :  { %v500_v18 = vmul.f32 %v2346_v36, %v188_v60  ;;  %v938_v48 = vld [vmem:[%s4054_s0 + $0x2c8] sm:$0xff]  ;;  %v2628_v60 = vmul.f32 %v2412_v5, %v337_v40  ;;  %v1033_v61 = vpack.c.bf16 %v906_v46, %v905_v41  ;;  %v935_v6 = vld [vmem:[%s4054_s0 + $0x2b0] sm:$0xff]  ;;  %v936_v7 = vld [vmem:[%s4054_s0 + $0x2b8] sm:$0xff] }
  0x1c   :  { %v2625_v59 = vmul.f32 %v2412_v5, %v327_v39  ;;  %v922_v0 = vld [vmem:[%s4054_s0 + $0x248] sm:$0xff] }
  0x1d   :  { %1865 = vmatpush3.bf16.msra.mxu0 %v1006_v11  ;;  %2242 = vmatpush3.bf16.msra.mxu1 %v1006_v11  ;;  %v1035_v11 = vpack.c.bf16 %v910_v57, %v909_v54  ;;  %v740_v44 = vpack.c.bf16 %v510_v19, %v500_v18  ;;  %v889_v57 = vld [vmem:[%s4054_s0 + $0x140] sm:$0xff]  ;;  %v2664_v13 = vld [vmem:[%s4055_s2 + $0x168] sm:$0xff]  ;;  %v347_v19 = vunpack.c.l.bf16 %v2577_v32 }
  0x1e   :  { %1866 = vmatprep.subr.bf16.mxu0 %v1013_v17  ;;  %2235 = vmatprep.subr.bf16.mxu1 %v1013_v17  ;;  %v629_v17 = vmul.f32 %v2412_v5, %v317_v56  ;;  %v2616_v56 = vmul.f32 %v2412_v5, %v197_v29  ;;  %v809_v23 = vpack.c.bf16 %v2628_v60, %v2625_v59  ;;  %v901_v29 = vld [vmem:[%s4054_s0 + $0x1a0] sm:$0xff]  ;;  %v238_v33 = vunpack.c.h.bf16 %v2664_v13  ;;  %v934_v39 = vld [vmem:[%s4054_s0 + $0x2a8] sm:$0xff]  ;;  %v2753_v60 = vld [vmem:[%s4055_s2 + $0x190] sm:$0xff] }
  0x20   :  { %v799_v42 = vpack.c.bf16 %v629_v17, %v2538_v10  ;;  %v670_v10 = vmul.f32 %v2346_v36, %v358_v53  ;;  %v1025_v17 = vpack.c.bf16 %v890_v58, %v889_v57  ;;  %v2745_v58 = vmul.f32 %v2346_v36, %v238_v33 }
  0x21   :  { %1867 = vmatpush3.bf16.msra.mxu0 %v1005_v27  ;;  %2243 = vmatpush3.bf16.msra.mxu1 %v1005_v27  ;;  %v1050_v27 = vpack.c.bf16 %v940_v16, %v939_v14  ;;  %v2669_v14 = vld [vmem:[%s4055_s2 + $0x370] sm:$0xff] }
  0x22   :  { %2040 = vmatprep.subr.bf16.mxu0 %v1052_v34  ;;  %1946 = vmatprep.subr.bf16.mxu1 %v1036_v35  ;;  %v729_v34 = vpack.c.bf16 %v2535_v9, %v2523_v4  ;;  %v923_v35 = vld [vmem:[%s4054_s0 + $0x250] sm:$0xff]  ;;  %v904_v4 = vld [vmem:[%s4054_s0 + $0x1b8] sm:$0xff]  ;;  %v660_v9 = vmul.f32 %v2346_v36, %v348_v52 }
  0x23   :  { %v1042_v54 = vpack.c.bf16 %v924_v38, %v923_v35  ;;  %v902_v35 = vld [vmem:[%s4054_s0 + $0x1a8] sm:$0xff]  ;;  %v933_v38 = vld [vmem:[%s4054_s0 + $0x2a0] sm:$0xff] }
  0x24   :  { %1156 = vmatmul.mubr.bf16.vlgmr.msra.gmra.mxu0 %v719_v50  ;;  %1212 = vmatmul.mubr.bf16.vlgmr.msra.gmra.mxu1 %v789_v55  ;;  %v810_v50 = vpack.c.bf16 %v650_v22, %v640_v21  ;;  %v2613_v55 = vmul.f32 %v2412_v5, %v187_v28  ;;  %v888_v21 = vld [vmem:[%s4054_s0 + $0x138] sm:$0xff]  ;;  %v820_v41 = vpack.c.bf16 %v670_v10, %v660_v9 }
  0x25   :  { %2041 = vmatpush3.bf16.msra.mxu0 %v1044_v51  ;;  %1947 = vmatpush3.bf16.msra.mxu1 %v1028_v62  ;;  %v218_v51 = vunpack.c.h.bf16 %v2572_v30  ;;  %v1049_v62 = vpack.c.bf16 %v938_v48, %v937_v47  ;;  %v2683_v22 = vld [vmem:[%s4055_s2 + $0x398] sm:$0xff]  ;;  %v885_v48 = vld [vmem:[%s4054_s0 + $0x120] sm:$0xff]  ;;  %v1031_v52 = vpack.c.bf16 %v902_v35, %v901_v29  ;;  %v1047_v53 = vpack.c.bf16 %v934_v39, %v933_v38 }
  0x26   :  { %1163 = vmatprep.mubr.bf16.mxu0 %v730_v2  ;;  %1219 = vmatprep.mubr.bf16.mxu1 %v800_v3  ;;  %v2640_v2 = vmul.f32 %v2346_v36, %v208_v49  ;;  %v207_v3 = vunpack.c.l.bf16 %v2565_v25  ;;  %v739_v16 = vpack.c.bf16 %v2616_v56, %v2613_v55  ;;  %v1032_v25 = vpack.c.bf16 %v904_v4, %v903_v1  ;;  %v920_v28 = vld [vmem:[%s4054_s0 + $0x238] sm:$0xff]  ;;  %v886_v49 = vld [vmem:[%s4054_s0 + $0x128] sm:$0xff]  ;;  %v899_v55 = vld [vmem:[%s4054_s0 + $0x190] sm:$0xff] }
  0x27   :  { %2042 = vmatprep.subr.bf16.mxu0 %v1051_v63  ;;  %1948 = vmatprep.subr.bf16.mxu1 %v1035_v11  ;;  %v921_v63 = vld [vmem:[%s4054_s0 + $0x240] sm:$0xff]  ;;  %v530_v8 = vmul.f32 %v2346_v36, %v218_v51  ;;  %v217_v11 = vunpack.c.l.bf16 %v2572_v30  ;;  %v2730_v51 = vmul.f32 %v2412_v5, %v357_v24  ;;  %v900_v56 = vld [vmem:[%s4054_s0 + $0x198] sm:$0xff]  ;;  %v237_v1 = vunpack.c.l.bf16 %v2664_v13 }
  0x28   :  { %v1041_v18 = vpack.c.bf16 %v922_v0, %v921_v63  ;;  %v2698_v30 = vmul.f32 %v2412_v5, %v207_v3  ;;  %v2768_v3 = vld [vmem:[%s4055_s2 + $0x1b8] sm:$0xff]  ;;  %v2773_v4 = vld [vmem:[%s4055_s2 + $0x3c0] sm:$0xff]  ;;  %v1023_v9 = vpack.c.bf16 %v886_v49, %v885_v48  ;;  %v975_v49 = vld [vmem:[%s4054_s0 + $0x3f0] sm:$0xff] }
  0x29   :  { %2043 = vmatpush3.bf16.msra.mxu0 %v1043_v12  ;;  %1949 = vmatpush3.bf16.msra.mxu1 %v1027_v20  ;;  %v2659_v12 = vld [vmem:[%s4055_s2 + $0x140] sm:$0xff]  ;;  %v887_v20 = vld [vmem:[%s4054_s0 + $0x130] sm:$0xff]  ;;  %v750_v40 = vpack.c.bf16 %v530_v8, %v2640_v2  ;;  %v367_v2 = vunpack.c.l.bf16 %v2669_v14  ;;  %v377_v8 = vunpack.c.l.bf16 %v2683_v22 }
  0x2a   :  { %1950 = vmatprep.subr.bf16.mxu1 %v1034_v26  ;;  %2044 = vmatprep.subr.bf16.mxu0 %v1050_v27  ;;  %v1048_v26 = vpack.c.bf16 %v936_v7, %v935_v6  ;;  %v919_v27 = vld [vmem:[%s4054_s0 + $0x230] sm:$0xff]  ;;  %v228_v32 = vunpack.c.h.bf16 %v2659_v12  ;;  %v1024_v46 = vpack.c.bf16 %v888_v21, %v887_v20  ;;  %v227_v0 = vunpack.c.l.bf16 %v2659_v12  ;;  %v2778_v6 = vld [vmem:[%s4055_s2 + $0x3e8] sm:$0xff]  ;;  %v884_v12 = vld [vmem:[%s4054_s0 + $0x118] sm:$0xff] }
  0x2b   :  { %v1040_v47 = vpack.c.bf16 %v920_v28, %v919_v27  ;;  %v897_v20 = vld [vmem:[%s4054_s0 + $0x180] sm:$0xff]  ;;  %v398_v24 = vunpack.c.h.bf16 %v2778_v6  ;;  %v930_v27 = vld [vmem:[%s4054_s0 + $0x288] sm:$0xff]  ;;  %v689_v33 = vmul.f32 %v2412_v5, %v377_v8 }
  0x2c   :  { %1164 = vmatmul.mubr.bf16.gmra.mxu0 %v729_v34  ;;  %1220 = vmatmul.mubr.bf16.gmra.mxu1 %v799_v42  ;;  %v368_v34 = vunpack.c.h.bf16 %v2669_v14  ;;  %v2714_v42 = vmul.f32 %v2412_v5, %v217_v11  ;;  %v2742_v57 = vmul.f32 %v2346_v36, %v228_v32  ;;  %v883_v11 = vld [vmem:[%s4054_s0 + $0x110] sm:$0xff]  ;;  %v1030_v14 = vpack.c.bf16 %v900_v56, %v899_v55  ;;  %v881_v38 = vld [vmem:[%s4054_s0 + $0x100] sm:$0xff]  ;;  %v80_v56 = vld [vmem:[%s4055_s2 + $0x208] sm:$0xff] }
  0x2d   :  { %1171 = vmatprep.mubr.bf16.mxu0 %v740_v44  ;;  %1227 = vmatprep.mubr.bf16.mxu1 %v810_v50  ;;  %v378_v44 = vunpack.c.h.bf16 %v2683_v22  ;;  %v917_v50 = vld [vmem:[%s4054_s0 + $0x220] sm:$0xff]  ;;  %v258_v22 = vunpack.c.h.bf16 %v2768_v3  ;;  %v539_v29 = vmul.f32 %v2412_v5, %v227_v0  ;;  %v679_v32 = vmul.f32 %v2412_v5, %v367_v2 }
  0x2e   :  { %1951 = vmatpush3.bf16.msra.mxu1 %v1026_v45  ;;  %2045 = vmatpush3.bf16.msra.mxu0 %v1042_v54  ;;  %v2718_v45 = vmul.f32 %v2412_v5, %v347_v19  ;;  %v918_v54 = vld [vmem:[%s4054_s0 + $0x228] sm:$0xff]  ;;  %v2748_v59 = vmul.f32 %v2346_v36, %v368_v34  ;;  %v749_v7 = vpack.c.bf16 %v2714_v42, %v2698_v30  ;;  %v916_v19 = vld [vmem:[%s4054_s0 + $0x218] sm:$0xff] }
  0x2f   :  { %1952 = vmatprep.subr.bf16.mxu1 %v1033_v61  ;;  %2046 = vmatprep.subr.bf16.mxu0 %v1049_v62  ;;  %v931_v61 = vld [vmem:[%s4054_s0 + $0x290] sm:$0xff]  ;;  %v932_v62 = vld [vmem:[%s4054_s0 + $0x298] sm:$0xff]  ;;  %v690_v63 = vmul.f32 %v2346_v36, %v378_v44  ;;  %v1039_v10 = vpack.c.bf16 %v918_v54, %v917_v50  ;;  %v760_v21 = vpack.c.bf16 %v2745_v58, %v2742_v57  ;;  %v913_v44 = vld [vmem:[%s4054_s0 + $0x200] sm:$0xff] }
  0x30   :  { %v819_v13 = vpack.c.bf16 %v2730_v51, %v2718_v45  ;;  %v549_v30 = vmul.f32 %v2412_v5, %v237_v1  ;;  %v1022_v34 = vpack.c.bf16 %v884_v12, %v883_v11  ;;  %v914_v45 = vld [vmem:[%s4054_s0 + $0x208] sm:$0xff]  ;;  %v710_v48 = vmul.f32 %v2346_v36, %v398_v24  ;;  %v976_v50 = vld [vmem:[%s4054_s0 + $0x3f8] sm:$0xff]  ;;  %v21_v58 = vld [vmem:[%s4055_s2 + $0x30] sm:$0xff] }
  0x31   :  { %v830_v28 = vpack.c.bf16 %v690_v63, %v2748_v59  ;;  %v829_v54 = vpack.c.bf16 %v689_v33, %v679_v32  ;;  %v16_v57 = vld [vmem:[%s4055_s2 + $0x8] sm:$0xff]  ;;  %v1037_v59 = vpack.c.bf16 %v914_v45, %v913_v44  ;;  %v387_v63 = vunpack.c.l.bf16 %v2773_v4 }
  0x32   :  { %1953 = vmatpush3.bf16.msra.mxu1 %v1025_v17  ;;  %2047 = vmatpush3.bf16.msra.mxu0 %v1041_v18  ;;  %v1046_v17 = vpack.c.bf16 %v932_v62, %v931_v61  ;;  %v915_v18 = vld [vmem:[%s4054_s0 + $0x210] sm:$0xff]  ;;  %v759_v51 = vpack.c.bf16 %v549_v30, %v539_v29  ;;  %v247_v61 = vunpack.c.l.bf16 %v2753_v60  ;;  %v257_v62 = vunpack.c.l.bf16 %v2768_v3 }
  0x33   :  { %1954 = vmatprep.subr.bf16.mxu1 %v1032_v25  ;;  %2048 = vmatprep.subr.bf16.mxu0 %v1048_v26  ;;  %v898_v25 = vld [vmem:[%s4054_s0 + $0x188] sm:$0xff]  ;;  %v929_v26 = vld [vmem:[%s4054_s0 + $0x280] sm:$0xff]  ;;  %v1038_v35 = vpack.c.bf16 %v916_v19, %v915_v18  ;;  %v1068_v0 = vpack.c.bf16 %v976_v50, %v975_v49  ;;  %v160_v11 = vunpack.c.h.bf16 %v21_v58  ;;  %v159_v24 = vunpack.c.l.bf16 %v21_v58 }
  0x34   :  { %1172 = vmatmul.mubr.bf16.gmra.mxu0 %v739_v16  ;;  %1228 = vmatmul.mubr.bf16.gmra.mxu1 %v809_v23  ;;  %v248_v16 = vunpack.c.h.bf16 %v2753_v60  ;;  %v388_v23 = vunpack.c.h.bf16 %v2773_v4  ;;  %v1045_v42 = vpack.c.bf16 %v930_v27, %v929_v26  ;;  %v559_v60 = vmul.f32 %v2412_v5, %v247_v61  ;;  %v22_v26 = vld [vmem:[%s4055_s2 + $0x38] sm:$0xff]  ;;  %v2937_v58 = vld [vmem:[%s4055_s2 + $0x88] sm:$0xff] }
  0x35   :  { %1179 = vmatprep.mubr.bf16.mxu0 %v750_v40  ;;  %1235 = vmatprep.mubr.bf16.mxu1 %v820_v41  ;;  %v1029_v40 = vpack.c.bf16 %v898_v25, %v897_v20  ;;  %v882_v41 = vld [vmem:[%s4054_s0 + $0x108] sm:$0xff]  ;;  %v569_v3 = vmul.f32 %v2412_v5, %v257_v62  ;;  %v419_v4 = vsub.s32 2, %v2297_v15  ;;  %v2878_v20 = vld [vmem:[%s4055_s2 + $0x58] sm:$0xff]  ;;  %v17_v25 = vld [vmem:[%s4055_s2 + $0x10] sm:$0xff]  ;;  %v277_v30 = vunpack.c.l.bf16 %v80_v56 }
  0x36   :  { %1955 = vmatpush3.bf16.msra.mxu1 %v1024_v46  ;;  %2049 = vmatpush3.bf16.msra.mxu0 %v1040_v47  ;;  %v560_v39 = vmul.f32 %v2346_v36, %v248_v16  ;;  %v570_v46 = vmul.f32 %v2346_v36, %v258_v22  ;;  %v700_v47 = vmul.f32 %v2346_v36, %v388_v23  ;;  %v431_v22 = vsub.s32 5, %v2297_v15  ;;  %v974_v61 = vld [vmem:[%s4054_s0 + $0x3e8] sm:$0xff] }
  0x37   :  { %1956 = vmatprep.subr.bf16.mxu1 %v1031_v52  ;;  %2050 = vmatprep.subr.bf16.mxu0 %v1047_v53  ;;  %v2845_v52 = vld [vmem:[%s4055_s2 + $0x1e0] sm:$0xff]  ;;  %v423_v53 = vsub.s32 3, %v2297_v15  ;;  %v1021_v55 = vpack.c.bf16 %v882_v41, %v881_v38  ;;  %v149_v23 = vunpack.c.l.bf16 %v16_v57  ;;  %v769_v27 = vpack.c.bf16 %v569_v3, %v559_v60 }
  0x38   :  { %v770_v1 = vpack.c.bf16 %v570_v46, %v560_v39  ;;  %v840_v2 = vpack.c.bf16 %v710_v48, %v700_v47  ;;  %v268_v8 = vunpack.c.h.bf16 %v2845_v52  ;;  %v267_v29 = vunpack.c.l.bf16 %v2845_v52  ;;  %v959_v47 = vld [vmem:[%s4054_s0 + $0x370] sm:$0xff]  ;;  %v960_v48 = vld [vmem:[%s4054_s0 + $0x378] sm:$0xff]  ;;  %v957_v3 = vld [vmem:[%s4054_s0 + $0x360] sm:$0xff] }
  0x39   :  { %v2863_v12 = vrot.slane %v2338_v31, %v423_v53  ;;  %v152_v38 = vunpack.c.h.bf16 %v17_v25  ;;  %v162_v39 = vunpack.c.h.bf16 %v22_v26  ;;  %v427_v44 = vsub.s32 4, %v2297_v15  ;;  %v2924_v53 = vld [vmem:[%s4055_s2 + $0xd0] sm:$0xff] }
  0x3a   :  { %1957 = vmatpush3.bf16.msra.mxu1 %v1023_v9  ;;  %2051 = vmatpush3.bf16.msra.mxu0 %v1039_v10  ;;  %v278_v9 = vunpack.c.h.bf16 %v80_v56  ;;  %v150_v10 = vunpack.c.h.bf16 %v16_v57  ;;  %v580_v16 = vmul.f32 %v2346_v36, %v268_v8  ;;  %v579_v45 = vmul.f32 %v2412_v5, %v267_v29  ;;  %v2986_v29 = vld [vmem:[%s4055_s2 + $0x120] sm:$0xff] }
  0x3b   :  { %1958 = vmatprep.subr.bf16.mxu1 %v1030_v14  ;;  %2052 = vmatprep.subr.bf16.mxu0 %v1046_v17  ;;  %v472_v19 = vmul.f32 %v2863_v12, %v160_v11  ;;  %v589_v46 = vmul.f32 %v2412_v5, %v277_v30  ;;  %v151_v56 = vunpack.c.l.bf16 %v17_v25  ;;  %v2932_v57 = vrot.slane %v2338_v31, %v427_v44  ;;  %v2978_v25 = vld [vmem:[%s4055_s2 + $0xf8] sm:$0xff]  ;;  %v2991_v30 = vld [vmem:[%s4055_s2 + $0xb0] sm:$0xff]  ;;  %v989_v44 = vld [vmem:[%s4054_s0 + $0x460] sm:$0xff] }
  0x3c   :  { %1180 = vmatmul.mubr.bf16.gmra.mxu0 %v749_v7  ;;  %1236 = vmatmul.mubr.bf16.gmra.mxu1 %v819_v13  ;;  %v397_v7 = vunpack.c.l.bf16 %v2778_v6  ;;  %v2246_v13 = vmov 0   ;;  %v699_v6 = vmul.f32 %v2412_v5, %v387_v63  ;;  %v590_v17 = vmul.f32 %v2346_v36, %v278_v9 }
  0x3d   :  { %1187 = vmatprep.mubr.bf16.mxu0 %v760_v21  ;;  %1243 = vmatprep.mubr.bf16.mxu1 %v830_v28  ;;  %v462_v18 = vmul.f32 %v2863_v12, %v150_v10  ;;  %v2883_v21 = vld [vmem:[%s4055_s2 + $0x80] sm:$0xff]  ;;  %v2887_v36 = vrot.slane %v2338_v31, %v419_v4  ;;  %v779_v62 = vpack.c.bf16 %v589_v46, %v579_v45  ;;  %v161_v63 = vunpack.c.l.bf16 %v22_v26  ;;  %v958_v4 = vld [vmem:[%s4054_s0 + $0x368] sm:$0xff]  ;;  %v955_v46 = vld [vmem:[%s4054_s0 + $0x350] sm:$0xff] }
  0x3e   :  { %1959 = vmatpush3.bf16.msra.mxu1 %v1022_v34  ;;  %2053 = vmatpush3.bf16.msra.mxu0 %v1038_v35  ;;  %v709_v14 = vmul.f32 %v2412_v5, %v397_v7  ;;  %v780_v32 = vpack.c.bf16 %v590_v17, %v580_v16  ;;  %v170_v34 = vunpack.c.h.bf16 %v2878_v20  ;;  %v180_v35 = vunpack.c.h.bf16 %v2883_v21  ;;  %v2919_v5 = vld [vmem:[%s4055_s2 + $0xa8] sm:$0xff]  ;;  %v972_v16 = vld [vmem:[%s4054_s0 + $0x3d8] sm:$0xff] }
  0x3f   :  { %1960 = vmatprep.subr.bf16.mxu1 %v1029_v40  ;;  %2054 = vmatprep.subr.bf16.mxu0 %v1045_v42  ;;  %v722_v33 = vpack.c.bf16 %v472_v19, %v462_v18  ;;  %v2899_v40 = vrot.slane %v2338_v31, %v431_v22  ;;  %v461_v41 = vmul.f32 %v2887_v36, %v149_v23  ;;  %v179_v31 = vunpack.c.l.bf16 %v2883_v21  ;;  %v992_v21 = vld [vmem:[%s4054_s0 + $0x478] sm:$0xff] }
  0x40   :  { %v839_v28 = vpack.c.bf16 %v709_v14, %v699_v6  ;;  %v471_v42 = vmul.f32 %v2887_v36, %v159_v24  ;;  %v482_v49 = vmul.f32 %v2863_v12, %v170_v34  ;;  %v492_v50 = vmul.f32 %v2863_v12, %v180_v35  ;;  %v971_v14 = vld [vmem:[%s4054_s0 + $0x3d0] sm:$0xff] }
  0x41   :  { %v474_v52 = vmul.f32 %v2899_v40, %v162_v39  ;;  %v190_v7 = vunpack.c.h.bf16 %v2919_v5  ;;  %v200_v8 = vunpack.c.h.bf16 %v2924_v53  ;;  %v182_v11 = vunpack.c.h.bf16 %v2937_v58 }
  0x42   :  { %1961 = vmatpush3.bf16.msra.mxu1 %v1021_v55  ;;  %2055 = vmatpush3.bf16.msra.mxu0 %v1037_v59  ;;  %v721_v55 = vpack.c.bf16 %v471_v42, %v461_v41  ;;  %v973_v59 = vld [vmem:[%s4054_s0 + $0x3e0] sm:$0xff]  ;;  %v463_v6 = vmul.f32 %v2932_v57, %v151_v56  ;;  %v473_v17 = vmul.f32 %v2932_v57, %v161_v63  ;;  %v199_v34 = vunpack.c.l.bf16 %v2924_v53  ;;  %v970_v53 = vld [vmem:[%s4054_s0 + $0x3c8] sm:$0xff] }
  0x43   :  { %2134 = vmatprep.subr.bf16.mxu1 %v1068_v0  ;;  %1671 = vmatprep.subr.bf16.mxu0 %v2246_v13  ;;  %v169_v0 = vunpack.c.l.bf16 %v2878_v20  ;;  %v1067_v60 = vpack.c.bf16 %v974_v61, %v973_v59  ;;  %v491_v19 = vmul.f32 %v2887_v36, %v179_v31  ;;  %v991_v20 = vld [vmem:[%s4054_s0 + $0x470] sm:$0xff]  ;;  %v502_v22 = vmul.f32 %v2863_v12, %v190_v7  ;;  %v953_v31 = vld [vmem:[%s4054_s0 + $0x340] sm:$0xff] }
  0x44   :  { %1188 = vmatmul.mubr.bf16.gmra.mxu0 %v759_v51  ;;  %1244 = vmatmul.mubr.bf16.gmra.mxu1 %v829_v54  ;;  %v464_v51 = vmul.f32 %v2899_v40, %v152_v38  ;;  %v2929_v54 = vld [vmem:[%s4055_s2 + $0x60] sm:$0xff]  ;;  %v512_v23 = vmul.f32 %v2863_v12, %v200_v8  ;;  %v1059_v24 = vpack.c.bf16 %v958_v4, %v957_v3  ;;  %v181_v38 = vunpack.c.l.bf16 %v2937_v58  ;;  %v987_v3 = vld [vmem:[%s4054_s0 + $0x450] sm:$0xff] }
  0x45   :  { %1195 = vmatprep.mubr.bf16.mxu0 %v770_v1  ;;  %1251 = vmatprep.mubr.bf16.mxu1 %v840_v2  ;;  %v1060_v1 = vpack.c.bf16 %v960_v48, %v959_v47  ;;  %v732_v2 = vpack.c.bf16 %v492_v50, %v482_v49  ;;  %v172_v10 = vunpack.c.h.bf16 %v2929_v54  ;;  %v481_v18 = vmul.f32 %v2887_v36, %v169_v0  ;;  %v956_v47 = vld [vmem:[%s4054_s0 + $0x358] sm:$0xff]  ;;  %v990_v49 = vld [vmem:[%s4054_s0 + $0x468] sm:$0xff]  ;;  %v3056_v4 = vld [vmem:[%s4055_s2 + $0x100] sm:$0xff] }
  0x46   :  { %v724_v9 = vpack.c.bf16 %v474_v52, %v464_v51  ;;  %v171_v35 = vunpack.c.l.bf16 %v2929_v54  ;;  %v723_v41 = vpack.c.bf16 %v473_v17, %v463_v6  ;;  %v1076_v42 = vpack.c.bf16 %v992_v21, %v991_v20  ;;  %v3061_v6 = vld [vmem:[%s4055_s2 + $0x128] sm:$0xff]  ;;  %v988_v17 = vld [vmem:[%s4054_s0 + $0x458] sm:$0xff] }
  0x47   :  { %v484_v26 = vmul.f32 %v2899_v40, %v172_v10  ;;  %v731_v39 = vpack.c.bf16 %v491_v19, %v481_v18  ;;  %v210_v45 = vunpack.c.h.bf16 %v2978_v25  ;;  %v742_v48 = vpack.c.bf16 %v512_v23, %v502_v22  ;;  %v3045_v10 = vld [vmem:[%s4055_s2 + $0x170] sm:$0xff]  ;;  %v968_v20 = vld [vmem:[%s4054_s0 + $0x3b8] sm:$0xff] }
  0x48   :  { %v220_v50 = vunpack.c.h.bf16 %v2986_v29  ;;  %v192_v51 = vunpack.c.h.bf16 %v2991_v30  ;;  %v511_v56 = vmul.f32 %v2887_v36, %v199_v34  ;;  %v483_v58 = vmul.f32 %v2932_v57, %v171_v35  ;;  %v967_v19 = vld [vmem:[%s4054_s0 + $0x3b0] sm:$0xff]  ;;  %v985_v35 = vld [vmem:[%s4054_s0 + $0x440] sm:$0xff] }
  0x49   :  { %v493_v59 = vmul.f32 %v2932_v57, %v181_v38  ;;  %v1058_v61 = vpack.c.bf16 %v956_v47, %v955_v46  ;;  %v522_v63 = vmul.f32 %v2863_v12, %v210_v45  ;;  %v1074_v34 = vpack.c.bf16 %v988_v17, %v987_v3  ;;  %v965_v45 = vld [vmem:[%s4054_s0 + $0x3a0] sm:$0xff]  ;;  %v966_v46 = vld [vmem:[%s4054_s0 + $0x3a8] sm:$0xff] }
  0x4a   :  { %v504_v7 = vmul.f32 %v2899_v40, %v192_v51  ;;  %v1064_v38 = vpack.c.bf16 %v968_v20, %v967_v19 }
  0x4b   :  { %v733_v22 = vpack.c.bf16 %v493_v59, %v483_v58  ;;  %v3129_v58 = vld [vmem:[%s4055_s2 + $0x178] sm:$0xff]  ;;  %v1063_v59 = vpack.c.bf16 %v966_v46, %v965_v45 }
  0x4c   :  { %1196 = vmatmul.mubr.bf16.gmra.mxu0 %v769_v27  ;;  %1252 = vmatmul.mubr.bf16.gmra.mxu1 %v839_v28  ;;  %v494_v27 = vmul.f32 %v2899_v40, %v182_v11  ;;  %v189_v28 = vunpack.c.l.bf16 %v2919_v5  ;;  %v969_v5 = vld [vmem:[%s4054_s0 + $0x3c0] sm:$0xff]  ;;  %v209_v11 = vunpack.c.l.bf16 %v2978_v25  ;;  %v951_v25 = vld [vmem:[%s4054_s0 + $0x330] sm:$0xff]  ;;  %v242_v3 = vunpack.c.h.bf16 %v3129_v58 }
  0x4d   :  { %1203 = vmatprep.mubr.bf16.mxu0 %v780_v32  ;;  %1292 = vmatprep.mubr.bf16.mxu1 %v722_v33  ;;  %v2996_v32 = vld [vmem:[%s4055_s2 + $0xd8] sm:$0xff]  ;;  %v1066_v33 = vpack.c.bf16 %v972_v16, %v971_v14  ;;  %v1065_v0 = vpack.c.bf16 %v970_v53, %v969_v5  ;;  %v191_v14 = vunpack.c.l.bf16 %v2991_v30  ;;  %v222_v30 = vunpack.c.h.bf16 %v3061_v6 }
  0x4e   :  { %v202_v52 = vunpack.c.h.bf16 %v2996_v32  ;;  %v734_v54 = vpack.c.bf16 %v494_v27, %v484_v26  ;;  %v201_v16 = vunpack.c.l.bf16 %v2996_v32  ;;  %v952_v26 = vld [vmem:[%s4054_s0 + $0x338] sm:$0xff]  ;;  %v521_v32 = vmul.f32 %v2887_v36, %v209_v11 }
  0x4f   :  { %v3114_v5 = vld [vmem:[%s4055_s2 + $0x198] sm:$0xff] }
  0x50   :  { %v514_v8 = vmul.f32 %v2899_v40, %v202_v52  ;;  %v534_v52 = vmul.f32 %v2899_v40, %v222_v30  ;;  %v250_v11 = vunpack.c.h.bf16 %v3114_v5  ;;  %v249_v30 = vunpack.c.l.bf16 %v3114_v5 }
  0x52   :  { %v562_v20 = vmul.f32 %v2863_v12, %v250_v11  ;;  %v3238_v11 = vld [vmem:[%s4055_s2 + $0x238] sm:$0xff] }
  0x54   :  { %1204 = vmatmul.mubr.bf16.gmra.mxu0 %v779_v62  ;;  %1293 = vmatmul.mubr.bf16.vlgmr.msra.gmra.mxu1 %v721_v55  ;;  %v501_v55 = vmul.f32 %v2887_v36, %v189_v28  ;;  %v1075_v62 = vpack.c.bf16 %v990_v49, %v989_v44  ;;  %v744_v28 = vpack.c.bf16 %v514_v8, %v504_v7  ;;  %v949_v49 = vld [vmem:[%s4054_s0 + $0x320] sm:$0xff]  ;;  %v211_v7 = vunpack.c.l.bf16 %v3056_v4 }
  0x55   :  { %2135 = vmatpush3.bf16.msra.mxu1 %v1060_v1  ;;  %1300 = vmatprep.mubr.bf16.mxu1 %v732_v2  ;;  %v954_v1 = vld [vmem:[%s4054_s0 + $0x348] sm:$0xff]  ;;  %v532_v2 = vmul.f32 %v2863_v12, %v220_v50  ;;  %v1056_v44 = vpack.c.bf16 %v952_v26, %v951_v25  ;;  %v221_v8 = vunpack.c.l.bf16 %v3061_v6  ;;  %v554_v26 = vmul.f32 %v2899_v40, %v242_v3  ;;  %v3253_v3 = vld [vmem:[%s4055_s2 + $0x218] sm:$0xff] }
  0x56   :  { %1429 = vmatprep.mubr.bf16.mxu0 %v724_v9  ;;  %2136 = vmatprep.subr.bf16.mxu1 %v1067_v60  ;;  %v3040_v9 = vld [vmem:[%s4055_s2 + $0x148] sm:$0xff]  ;;  %v219_v60 = vunpack.c.l.bf16 %v2986_v29  ;;  %v1057_v18 = vpack.c.bf16 %v954_v1, %v953_v31  ;;  %v741_v21 = vpack.c.bf16 %v511_v56, %v501_v55  ;;  %v212_v29 = vunpack.c.h.bf16 %v3056_v4  ;;  %v3119_v55 = vld [vmem:[%s4055_s2 + $0x1c0] sm:$0xff]  ;;  %v3124_v56 = vld [vmem:[%s4055_s2 + $0x150] sm:$0xff] }
  0x57   :  { %v230_v23 = vunpack.c.h.bf16 %v3040_v9  ;;  %v752_v27 = vpack.c.bf16 %v532_v2, %v522_v63  ;;  %v950_v50 = vld [vmem:[%s4054_s0 + $0x328] sm:$0xff]  ;;  %v239_v63 = vunpack.c.l.bf16 %v3045_v10  ;;  %v984_v31 = vld [vmem:[%s4054_s0 + $0x438] sm:$0xff]  ;;  %v981_v4 = vld [vmem:[%s4054_s0 + $0x420] sm:$0xff]  ;;  %v533_v19 = vmul.f32 %v2932_v57, %v221_v8 }
  0x58   :  { %v524_v51 = vmul.f32 %v2899_v40, %v212_v29  ;;  %v1055_v1 = vpack.c.bf16 %v950_v50, %v949_v49  ;;  %v982_v6 = vld [vmem:[%s4054_s0 + $0x428] sm:$0xff]  ;;  %v948_v29 = vld [vmem:[%s4054_s0 + $0x318] sm:$0xff] }
  0x59   :  { %2137 = vmatpush3.bf16.msra.mxu1 %v1059_v24  ;;  %v240_v24 = vunpack.c.h.bf16 %v3045_v10  ;;  %v542_v47 = vmul.f32 %v2863_v12, %v230_v23  ;;  %v260_v10 = vunpack.c.h.bf16 %v3119_v55  ;;  %v551_v17 = vmul.f32 %v2887_v36, %v239_v63  ;;  %v964_v23 = vld [vmem:[%s4054_s0 + $0x398] sm:$0xff]  ;;  %v962_v63 = vld [vmem:[%s4054_s0 + $0x388] sm:$0xff] }
  0x5a   :  { %2138 = vmatprep.subr.bf16.mxu1 %v1066_v33  ;;  %v531_v33 = vmul.f32 %v2887_v36, %v219_v60  ;;  %v232_v60 = vunpack.c.h.bf16 %v3124_v56 }
  0x5c   :  { %1301 = vmatmul.mubr.bf16.gmra.mxu1 %v731_v39  ;;  %1430 = vmatmul.mubr.bf16.vlgmr.msra.gmra.mxu0 %v723_v41  ;;  %v503_v39 = vmul.f32 %v2932_v57, %v191_v14  ;;  %v513_v41 = vmul.f32 %v2932_v57, %v201_v16  ;;  %v751_v53 = vpack.c.bf16 %v531_v33, %v521_v32  ;;  %v259_v32 = vunpack.c.l.bf16 %v3119_v55  ;;  %v3188_v33 = vld [vmem:[%s4055_s2 + $0x1a0] sm:$0xff] }
  0x5d   :  { %1672 = vmatpush1.bf16.msra.mxu0 %v1076_v42  ;;  %1308 = vmatprep.mubr.bf16.mxu1 %v742_v48  ;;  %v986_v42 = vld [vmem:[%s4054_s0 + $0x448] sm:$0xff]  ;;  %v552_v48 = vmul.f32 %v2863_v12, %v240_v24  ;;  %v572_v24 = vmul.f32 %v2863_v12, %v260_v10  ;;  %v544_v25 = vmul.f32 %v2899_v40, %v232_v60  ;;  %v3243_v10 = vld [vmem:[%s4055_s2 + $0x260] sm:$0xff]  ;;  %v3248_v60 = vld [vmem:[%s4055_s2 + $0x1f0] sm:$0xff] }
  0x5e   :  { %1437 = vmatprep.mubr.bf16.mxu0 %v734_v54  ;;  %1673 = vmatprep.subr.bf16.mxu0 %v2246_v13  ;;  %v1073_v54 = vpack.c.bf16 %v986_v42, %v985_v35  ;;  %v1071_v35 = vpack.c.bf16 %v982_v6, %v981_v4  ;;  %v979_v42 = vld [vmem:[%s4054_s0 + $0x410] sm:$0xff] }
  0x5f   :  { %2139 = vmatpush3.bf16.msra.mxu1 %v1058_v61  ;;  %v743_v61 = vpack.c.bf16 %v513_v41, %v503_v39  ;;  %v762_v2 = vpack.c.bf16 %v552_v48, %v542_v47  ;;  %v231_v39 = vunpack.c.l.bf16 %v3124_v56  ;;  %v241_v41 = vunpack.c.l.bf16 %v3129_v58  ;;  %v977_v56 = vld [vmem:[%s4054_s0 + $0x400] sm:$0xff] }
  0x60   :  { %2140 = vmatprep.subr.bf16.mxu1 %v1065_v0  ;;  %v983_v0 = vld [vmem:[%s4054_s0 + $0x430] sm:$0xff]  ;;  %v772_v50 = vpack.c.bf16 %v572_v24, %v562_v20 }
  0x61   :  { %1674 = vmatpush1.bf16.msra.mxu0 %v1075_v62  ;;  %v229_v62 = vunpack.c.l.bf16 %v3040_v9  ;;  %v754_v9 = vpack.c.bf16 %v534_v52, %v524_v51  ;;  %v1072_v14 = vpack.c.bf16 %v984_v31, %v983_v0  ;;  %v764_v51 = vpack.c.bf16 %v554_v26, %v544_v25 }
  0x62   :  { %1675 = vmatprep.subr.bf16.mxu0 %v2246_v13  ;;  %v252_v52 = vunpack.c.h.bf16 %v3188_v33  ;;  %v543_v58 = vmul.f32 %v2932_v57, %v231_v39  ;;  %v300_v26 = vunpack.c.h.bf16 %v3243_v10 }
  0x63   :  { %2141 = vmatpush3.bf16.msra.mxu1 %v1057_v18  ;;  %v541_v16 = vmul.f32 %v2887_v36, %v229_v62  ;;  %v523_v18 = vmul.f32 %v2932_v57, %v211_v7  ;;  %v961_v62 = vld [vmem:[%s4054_s0 + $0x380] sm:$0xff] }
  0x64   :  { %1309 = vmatmul.mubr.bf16.gmra.mxu1 %v741_v21  ;;  %1438 = vmatmul.mubr.bf16.gmra.mxu0 %v733_v22  ;;  %v3161_v21 = vld [vmem:[%s4055_s2 + $0x1e8] sm:$0xff]  ;;  %v963_v22 = vld [vmem:[%s4054_s0 + $0x390] sm:$0xff]  ;;  %v564_v7 = vmul.f32 %v2899_v40, %v252_v52  ;;  %v271_v52 = vunpack.c.l.bf16 %v3248_v60 }
  0x65   :  { %1316 = vmatprep.mubr.bf16.mxu1 %v752_v27  ;;  %1445 = vmatprep.mubr.bf16.mxu0 %v744_v28  ;;  %v3175_v27 = vld [vmem:[%s4055_s2 + $0x210] sm:$0xff]  ;;  %v1062_v45 = vpack.c.bf16 %v964_v23, %v963_v22  ;;  %v753_v46 = vpack.c.bf16 %v533_v19, %v523_v18  ;;  %v270_v47 = vunpack.c.h.bf16 %v3161_v21  ;;  %v269_v4 = vunpack.c.l.bf16 %v3161_v21  ;;  %v1004_v19 = vld [vmem:[%s4054_s0 + $0x4d8] sm:$0xff] }
  0x66   :  { %1676 = vmatpush1.bf16.msra.mxu0 %v1074_v34  ;;  %2142 = vmatprep.subr.bf16.mxu1 %v1064_v38  ;;  %v947_v28 = vld [vmem:[%s4054_s0 + $0x310] sm:$0xff]  ;;  %v3193_v34 = vld [vmem:[%s4055_s2 + $0x1c8] sm:$0xff]  ;;  %v761_v38 = vpack.c.bf16 %v551_v17, %v541_v16  ;;  %v280_v48 = vunpack.c.h.bf16 %v3175_v27  ;;  %v1061_v16 = vpack.c.bf16 %v962_v63, %v961_v62  ;;  %v279_v6 = vunpack.c.l.bf16 %v3175_v27 }
  0x67   :  { %1677 = vmatprep.subr.bf16.mxu0 %v2246_v13  ;;  %2143 = vmatpush3.bf16.msra.mxu1 %v1056_v44  ;;  %v980_v44 = vld [vmem:[%s4054_s0 + $0x418] sm:$0xff]  ;;  %v1054_v49 = vpack.c.bf16 %v948_v29, %v947_v28  ;;  %v262_v5 = vunpack.c.h.bf16 %v3193_v34  ;;  %v582_v0 = vmul.f32 %v2863_v12, %v270_v47  ;;  %v1003_v18 = vld [vmem:[%s4054_s0 + $0x4d0] sm:$0xff]  ;;  %v251_v23 = vunpack.c.l.bf16 %v3188_v33  ;;  %v1001_v33 = vld [vmem:[%s4054_s0 + $0x4c0] sm:$0xff] }
  0x68   :  { %2144 = vmatprep.subr.bf16.mxu1 %v1063_v59  ;;  %v1070_v55 = vpack.c.bf16 %v980_v44, %v979_v42  ;;  %v553_v59 = vmul.f32 %v2932_v57, %v241_v41  ;;  %v592_v31 = vmul.f32 %v2863_v12, %v280_v48  ;;  %v261_v24 = vunpack.c.l.bf16 %v3193_v34  ;;  %v1002_v34 = vld [vmem:[%s4054_s0 + $0x4c8] sm:$0xff]  ;;  %v3294_v47 = vld [vmem:[%s4055_s2 + $0x240] sm:$0xff] }
  0x69   :  { %v574_v8 = vmul.f32 %v2899_v40, %v262_v5  ;;  %v290_v21 = vunpack.c.h.bf16 %v3238_v11  ;;  %v272_v27 = vunpack.c.h.bf16 %v3248_v60  ;;  %v282_v28 = vunpack.c.h.bf16 %v3253_v3  ;;  %v3299_v48 = vld [vmem:[%s4055_s2 + $0x268] sm:$0xff] }
  0x6a   :  { %1678 = vmatpush1.bf16.msra.mxu0 %v1073_v54  ;;  %v571_v54 = vmul.f32 %v2887_v36, %v259_v32  ;;  %v763_v17 = vpack.c.bf16 %v553_v59, %v543_v58  ;;  %v782_v22 = vpack.c.bf16 %v592_v31, %v582_v0  ;;  %v1082_v29 = vpack.c.bf16 %v1004_v19, %v1003_v18 }
  0x6b   :  { %1679 = vmatprep.subr.bf16.mxu0 %v2246_v13  ;;  %2145 = vmatpush3.bf16.msra.mxu1 %v1055_v1  ;;  %v945_v1 = vld [vmem:[%s4054_s0 + $0x300] sm:$0xff]  ;;  %v774_v25 = vpack.c.bf16 %v574_v8, %v564_v7  ;;  %v591_v32 = vmul.f32 %v2887_v36, %v279_v6  ;;  %v602_v39 = vmul.f32 %v2863_v12, %v290_v21  ;;  %v281_v5 = vunpack.c.l.bf16 %v3253_v3  ;;  %v102_v6 = vld [vmem:[%s4055_s2 + $0x2b8] sm:$0xff] }
  0x6c   :  { %1317 = vmatmul.mubr.bf16.gmra.mxu1 %v751_v53  ;;  %1446 = vmatmul.mubr.bf16.gmra.mxu0 %v743_v61  ;;  %v561_v53 = vmul.f32 %v2887_v36, %v249_v30  ;;  %v978_v61 = vld [vmem:[%s4054_s0 + $0x408] sm:$0xff]  ;;  %v581_v30 = vmul.f32 %v2887_v36, %v269_v4  ;;  %v612_v41 = vmul.f32 %v2863_v12, %v300_v26  ;;  %v292_v63 = vunpack.c.h.bf16 %v3294_v47  ;;  %v97_v4 = vld [vmem:[%s4055_s2 + $0x290] sm:$0xff]  ;;  %v996_v21 = vld [vmem:[%s4054_s0 + $0x498] sm:$0xff] }
  0x6d   :  { %1324 = vmatprep.mubr.bf16.mxu1 %v762_v2  ;;  %1453 = vmatprep.mubr.bf16.mxu0 %v754_v9  ;;  %v946_v2 = vld [vmem:[%s4054_s0 + $0x308] sm:$0xff]  ;;  %v584_v42 = vmul.f32 %v2899_v40, %v272_v27  ;;  %v594_v44 = vmul.f32 %v2899_v40, %v282_v28  ;;  %v302_v0 = vunpack.c.h.bf16 %v3299_v48  ;;  %v583_v7 = vmul.f32 %v2932_v57, %v271_v52 }
  0x6e   :  { %1680 = vmatpush1.bf16.msra.mxu0 %v1072_v14  ;;  %2146 = vmatprep.subr.bf16.mxu1 %v1062_v45  ;;  %v771_v9 = vpack.c.bf16 %v571_v54, %v561_v53  ;;  %v1069_v14 = vpack.c.bf16 %v978_v61, %v977_v56  ;;  %v1053_v20 = vpack.c.bf16 %v946_v2, %v945_v1  ;;  %v96_v45 = vld [vmem:[%s4055_s2 + $0x288] sm:$0xff]  ;;  %v999_v53 = vld [vmem:[%s4054_s0 + $0x4b0] sm:$0xff]  ;;  %v1000_v54 = vld [vmem:[%s4054_s0 + $0x4b8] sm:$0xff]  ;;  %v291_v26 = vunpack.c.l.bf16 %v3294_v47 }
  0x6f   :  { %1681 = vmatprep.subr.bf16.mxu0 %v2246_v13  ;;  %2147 = vmatpush3.bf16.msra.mxu1 %v1054_v49  ;;  %v1081_v49 = vpack.c.bf16 %v1002_v34, %v1001_v33  ;;  %v310_v58 = vunpack.c.h.bf16 %v96_v45  ;;  %v792_v61 = vpack.c.bf16 %v612_v41, %v602_v39  ;;  %v784_v62 = vpack.c.bf16 %v594_v44, %v584_v42  ;;  %v993_v39 = vld [vmem:[%s4054_s0 + $0x480] sm:$0xff]  ;;  %v994_v41 = vld [vmem:[%s4054_s0 + $0x488] sm:$0xff] }
  0x70   :  { %2148 = vmatprep.subr.bf16.mxu1 %v1061_v16  ;;  %v1080_v31 = vpack.c.bf16 %v1000_v54, %v999_v53  ;;  %v593_v8 = vmul.f32 %v2932_v57, %v281_v5  ;;  %v604_v3 = vmul.f32 %v2899_v40, %v292_v63  ;;  %v106_v16 = vld [vmem:[%s4055_s2 + $0x2d8] sm:$0xff]  ;;  %v301_v27 = vunpack.c.l.bf16 %v3299_v48  ;;  %v112_v52 = vld [vmem:[%s4055_s2 + $0x308] sm:$0xff] }
  0x71   :  { %v330_v28 = vunpack.c.h.bf16 %v106_v16  ;;  %v322_v33 = vunpack.c.h.bf16 %v102_v6  ;;  %v603_v42 = vmul.f32 %v2932_v57, %v291_v26  ;;  %v1077_v5 = vpack.c.bf16 %v994_v41, %v993_v39  ;;  %v141_v41 = vld [vmem:[%s4055_s2 + $0x3f0] sm:$0xff] }
  0x72   :  { %1682 = vmatpush1.bf16.msra.mxu0 %v1071_v35  ;;  %v563_v35 = vmul.f32 %v2932_v57, %v251_v23  ;;  %v613_v44 = vmul.f32 %v2932_v57, %v301_v27  ;;  %v329_v53 = vunpack.c.l.bf16 %v106_v16  ;;  %v117_v16 = vld [vmem:[%s4055_s2 + $0x330] sm:$0xff] }
  0x73   :  { %1683 = vmatprep.subr.bf16.mxu0 %v2246_v13  ;;  %2149 = vmatpush3.bf16.msra.mxu1 %v1053_v20  ;;  %v783_v20 = vpack.c.bf16 %v593_v8, %v583_v7  ;;  %v634_v48 = vmul.f32 %v2899_v40, %v322_v33  ;;  %v352_v26 = vunpack.c.h.bf16 %v117_v16 }
  0x74   :  { %1325 = vmatmul.mubr.bf16.gmra.mxu1 %v761_v38  ;;  %1454 = vmatmul.mubr.bf16.gmra.mxu0 %v753_v46  ;;  %v573_v38 = vmul.f32 %v2932_v57, %v261_v24  ;;  %v101_v46 = vld [vmem:[%s4055_s2 + $0x2b0] sm:$0xff] }
  0x75   :  { %1332 = vmatprep.mubr.bf16.mxu1 %v772_v50  ;;  %1461 = vmatprep.mubr.bf16.mxu0 %v764_v51  ;;  %v289_v50 = vunpack.c.l.bf16 %v3238_v11  ;;  %v299_v51 = vunpack.c.l.bf16 %v3243_v10  ;;  %v320_v59 = vunpack.c.h.bf16 %v101_v46  ;;  %v997_v11 = vld [vmem:[%s4054_s0 + $0x4a0] sm:$0xff]  ;;  %v622_v10 = vmul.f32 %v2863_v12, %v310_v58  ;;  %v995_v24 = vld [vmem:[%s4054_s0 + $0x490] sm:$0xff] }
  0x76   :  { %1684 = vmatpush1.bf16.msra.mxu0 %v1070_v55  ;;  %v781_v55 = vpack.c.bf16 %v591_v32, %v581_v30  ;;  %v773_v56 = vpack.c.bf16 %v573_v38, %v563_v35  ;;  %v319_v23 = vunpack.c.l.bf16 %v101_v46  ;;  %v312_v32 = vunpack.c.h.bf16 %v97_v4 }
  0x77   :  { %1685 = vmatprep.subr.bf16.mxu0 %v2246_v13  ;;  %v601_v1 = vmul.f32 %v2887_v36, %v289_v50  ;;  %v611_v2 = vmul.f32 %v2887_v36, %v299_v51  ;;  %v632_v60 = vmul.f32 %v2863_v12, %v320_v59  ;;  %v1078_v34 = vpack.c.bf16 %v996_v21, %v995_v24  ;;  %v121_v50 = vld [vmem:[%s4055_s2 + $0x350] sm:$0xff]  ;;  %v107_v51 = vld [vmem:[%s4055_s2 + $0x2e0] sm:$0xff] }
  0x78   :  { %v631_v38 = vmul.f32 %v2887_v36, %v319_v23  ;;  %v624_v47 = vmul.f32 %v2899_v40, %v312_v32  ;;  %v793_v59 = vpack.c.bf16 %v613_v44, %v603_v42  ;;  %v341_v23 = vunpack.c.l.bf16 %v112_v52  ;;  %v127_v42 = vld [vmem:[%s4055_s2 + $0x380] sm:$0xff]  ;;  %v132_v44 = vld [vmem:[%s4055_s2 + $0x3a8] sm:$0xff] }
  0x79   :  { %v791_v19 = vpack.c.bf16 %v611_v2, %v601_v1  ;;  %v342_v1 = vunpack.c.h.bf16 %v112_v52  ;;  %v641_v2 = vmul.f32 %v2887_v36, %v329_v53  ;;  %v400_v52 = vunpack.c.h.bf16 %v141_v41 }
  0x7a   :  { %1686 = vmatpush1.bf16.msra.mxu0 %v1069_v14  ;;  %v614_v14 = vmul.f32 %v2899_v40, %v302_v0  ;;  %v804_v0 = vpack.c.bf16 %v634_v48, %v624_v47  ;;  %v653_v32 = vmul.f32 %v2932_v57, %v341_v23  ;;  %v351_v48 = vunpack.c.l.bf16 %v117_v16 }
  0x7b   :  { %1691 = vmatprep.subr.bf16.mxu0 %v2246_v13  ;;  %v382_v53 = vunpack.c.h.bf16 %v132_v44  ;;  %v381_v16 = vunpack.c.l.bf16 %v132_v44 }
  0x7c   :  { %1333 = vmatmul.mubr.bf16.gmra.mxu1 %v771_v9  ;;  %1462 = vmatmul.mubr.bf16.gmra.mxu0 %v763_v17  ;;  %v998_v9 = vld [vmem:[%s4054_s0 + $0x4a8] sm:$0xff]  ;;  %v111_v17 = vld [vmem:[%s4055_s2 + $0x300] sm:$0xff] }
  0x7d   :  { %1340 = vmatprep.mubr.bf16.mxu1 %v782_v22  ;;  %1469 = vmatprep.mubr.bf16.mxu0 %v774_v25  ;;  %v1079_v18 = vpack.c.bf16 %v998_v9, %v997_v11  ;;  %v309_v22 = vunpack.c.l.bf16 %v96_v45  ;;  %v802_v25 = vpack.c.bf16 %v632_v60, %v622_v10  ;;  %v340_v30 = vunpack.c.h.bf16 %v111_v17 }
  0x7e   :  { %1692 = vmatpush2.bf16.msra.mxu0 %v1082_v29  ;;  %v794_v29 = vpack.c.bf16 %v614_v14, %v604_v3  ;;  %v642_v45 = vmul.f32 %v2863_v12, %v330_v28  ;;  %v339_v54 = vunpack.c.l.bf16 %v111_v17  ;;  %v654_v60 = vmul.f32 %v2899_v40, %v342_v1  ;;  %v126_v3 = vld [vmem:[%s4055_s2 + $0x378] sm:$0xff]  ;;  %v131_v14 = vld [vmem:[%s4055_s2 + $0x3a0] sm:$0xff]  ;;  %v137_v1 = vld [vmem:[%s4055_s2 + $0x3d0] sm:$0xff] }
  0x7f   :  { %1693 = vmatprep.subr.bf16.mxu0 %v2246_v13  ;;  %v621_v35 = vmul.f32 %v2887_v36, %v309_v22  ;;  %v652_v46 = vmul.f32 %v2863_v12, %v340_v30  ;;  %v122_v17 = vld [vmem:[%s4055_s2 + $0x358] sm:$0xff]  ;;  %v331_v22 = vunpack.c.l.bf16 %v107_v51  ;;  %v370_v24 = vunpack.c.h.bf16 %v126_v3 }
  0x80   :  { %v651_v7 = vmul.f32 %v2887_v36, %v339_v54  ;;  %v362_v27 = vunpack.c.h.bf16 %v122_v17 }
  0x81   :  { %v801_v58 = vpack.c.bf16 %v631_v38, %v621_v35  ;;  %v812_v63 = vpack.c.bf16 %v652_v46, %v642_v45  ;;  %v643_v30 = vmul.f32 %v2932_v57, %v331_v22  ;;  %v682_v33 = vmul.f32 %v2863_v12, %v370_v24 }
  0x82   :  { %1694 = vmatpush2.bf16.msra.mxu0 %v1081_v49  ;;  %v116_v49 = vld [vmem:[%s4055_s2 + $0x328] sm:$0xff]  ;;  %v664_v38 = vmul.f32 %v2899_v40, %v352_v26  ;;  %v674_v39 = vmul.f32 %v2899_v40, %v362_v27  ;;  %v369_v45 = vunpack.c.l.bf16 %v126_v3  ;;  %v379_v46 = vunpack.c.l.bf16 %v131_v14 }
  0x83   :  { %1695 = vmatprep.subr.bf16.mxu0 %v2246_v13  ;;  %v435_v24 = vsub.s32 6, %v2297_v15 }
  0x84   :  { %1341 = vmatmul.mubr.bf16.gmra.mxu1 %v781_v55  ;;  %1470 = vmatmul.mubr.bf16.gmra.mxu0 %v773_v56  ;;  %v311_v55 = vunpack.c.l.bf16 %v97_v4  ;;  %v321_v56 = vunpack.c.l.bf16 %v102_v6  ;;  %v811_v4 = vpack.c.bf16 %v651_v7, %v641_v2  ;;  %v439_v2 = vsub.s32 7, %v2297_v15  ;;  %v28_v15 = vld [vmem:[%s4055_s2 + $0x68] sm:$0xff] }
  0x85   :  { %1348 = vmatprep.mubr.bf16.mxu1 %v792_v61  ;;  %1477 = vmatprep.mubr.bf16.mxu0 %v784_v62  ;;  %v350_v61 = vunpack.c.h.bf16 %v116_v49  ;;  %v360_v62 = vunpack.c.h.bf16 %v121_v50 }
  0x86   :  { %1696 = vmatpush2.bf16.msra.mxu0 %v1080_v31  ;;  %v332_v31 = vunpack.c.h.bf16 %v107_v51  ;;  %v623_v8 = vmul.f32 %v2932_v57, %v311_v55  ;;  %v633_v11 = vmul.f32 %v2932_v57, %v321_v56  ;;  %v813_v51 = vpack.c.bf16 %v653_v32, %v643_v30  ;;  %v19_v32 = vld [vmem:[%s4055_s2 + $0x20] sm:$0xff] }
  0x87   :  { %1697 = vmatprep.subr.bf16.mxu0 %v2246_v13  ;;  %v672_v9 = vmul.f32 %v2863_v12, %v360_v62  ;;  %v824_v55 = vpack.c.bf16 %v674_v39, %v664_v38  ;;  %v681_v56 = vmul.f32 %v2887_v36, %v369_v45 }
  0x88   :  { %v644_v10 = vmul.f32 %v2899_v40, %v332_v31  ;;  %v803_v6 = vpack.c.bf16 %v633_v11, %v623_v8  ;;  %v694_v31 = vmul.f32 %v2899_v40, %v382_v53  ;;  %v142_v8 = vld [vmem:[%s4055_s2 + $0x3f8] sm:$0xff]  ;;  %v23_v11 = vld [vmem:[%s4055_s2 + $0x40] sm:$0xff] }
  0x89   :  { %v401_v38 = vunpack.c.l.bf16 %v142_v8 }
  0x8a   :  { %1698 = vmatpush2.bf16.msra.mxu0 %v1079_v18  ;;  %v349_v18 = vunpack.c.l.bf16 %v116_v49  ;;  %v814_v21 = vpack.c.bf16 %v654_v60, %v644_v10  ;;  %v361_v49 = vunpack.c.l.bf16 %v122_v17  ;;  %v399_v10 = vunpack.c.l.bf16 %v141_v41 }
  0x8b   :  { %1699 = vmatprep.subr.bf16.mxu0 %v2246_v13  ;;  %v371_v60 = vunpack.c.l.bf16 %v127_v42  ;;  %v392_v17 = vunpack.c.h.bf16 %v137_v1 }
  0x8c   :  { %1349 = vmatmul.mubr.bf16.gmra.mxu1 %v791_v19  ;;  %1478 = vmatmul.mubr.bf16.gmra.mxu0 %v783_v20  ;;  %v359_v19 = vunpack.c.l.bf16 %v121_v50  ;;  %v661_v28 = vmul.f32 %v2887_v36, %v349_v18  ;;  %v164_v18 = vunpack.c.h.bf16 %v23_v11  ;;  %v711_v23 = vmul.f32 %v2887_v36, %v399_v10 }
  0x8d   :  { %1356 = vmatprep.mubr.bf16.mxu1 %v802_v25  ;;  %1485 = vmatprep.mubr.bf16.mxu0 %v794_v29  ;;  %v380_v25 = vunpack.c.h.bf16 %v131_v14  ;;  %v704_v26 = vmul.f32 %v2899_v40, %v392_v17 }
  0x8e   :  { %1700 = vmatpush2.bf16.msra.mxu0 %v1078_v34  ;;  %v671_v29 = vmul.f32 %v2887_v36, %v359_v19  ;;  %v136_v34 = vld [vmem:[%s4055_s2 + $0x3c8] sm:$0xff]  ;;  %v2245_v19 = vld [vmem:[%s4056_s1] sm:$0xff] }
  0x8f   :  { %1701 = vmatprep.subr.bf16.mxu0 %v2246_v13  ;;  %v662_v13 = vmul.f32 %v2863_v12, %v350_v61  ;;  %v692_v35 = vmul.f32 %v2863_v12, %v380_v25  ;;  %v390_v50 = vunpack.c.h.bf16 %v136_v34  ;;  %v673_v61 = vmul.f32 %v2932_v57, %v361_v49 }
  0x90   :  { %v821_v47 = vpack.c.bf16 %v671_v29, %v661_v28  ;;  %v693_v25 = vmul.f32 %v2932_v57, %v381_v16 }
  0x91   :  { %v822_v20 = vpack.c.bf16 %v672_v9, %v662_v13  ;;  %v832_v54 = vpack.c.bf16 %v692_v35, %v682_v33  ;;  %v702_v62 = vmul.f32 %v2863_v12, %v390_v50  ;;  %v389_v9 = vunpack.c.l.bf16 %v136_v34 }
  0x92   :  { %1702 = vmatpush2.bf16.msra.mxu0 %v1077_v5  ;;  %v372_v5 = vunpack.c.h.bf16 %v127_v42  ;;  %v163_v33 = vunpack.c.l.bf16 %v23_v11  ;;  %v3465_v34 = vrot.slane %v2245_v19, %v435_v24  ;;  %v391_v35 = vunpack.c.l.bf16 %v137_v1 }
  0x93   :  { %v701_v22 = vmul.f32 %v2887_v36, %v389_v9  ;;  %v174_v42 = vunpack.c.h.bf16 %v28_v15  ;;  %v173_v1 = vunpack.c.l.bf16 %v28_v15 }
  0x94   :  { %1357 = vmatmul.mubr.bf16.gmra.mxu1 %v801_v58  ;;  %1486 = vmatmul.mubr.bf16.gmra.mxu0 %v793_v59  ;;  %v691_v58 = vmul.f32 %v2887_v36, %v379_v46  ;;  %v663_v59 = vmul.f32 %v2932_v57, %v351_v48  ;;  %v33_v36 = vld [vmem:[%s4055_s2 + $0x90] sm:$0xff]  ;;  %v475_v50 = vmul.f32 %v3465_v34, %v163_v33 }
  0x95   :  { %1364 = vmatprep.mubr.bf16.mxu1 %v812_v63  ;;  %1493 = vmatprep.mubr.bf16.mxu0 %v804_v0  ;;  %v712_v63 = vmul.f32 %v2863_v12, %v400_v52  ;;  %v684_v0 = vmul.f32 %v2899_v40, %v372_v5  ;;  %v18_v12 = vld [vmem:[%s4055_s2 + $0x18] sm:$0xff]  ;;  %v841_v39 = vpack.c.bf16 %v711_v23, %v701_v22  ;;  %v184_v44 = vunpack.c.h.bf16 %v33_v36  ;;  %v44_v22 = vld [vmem:[%s4055_s2 + $0xe8] sm:$0xff] }
  0x96   :  { %v831_v7 = vpack.c.bf16 %v691_v58, %v681_v56  ;;  %v823_v13 = vpack.c.bf16 %v673_v61, %v663_v59  ;;  %v153_v30 = vunpack.c.l.bf16 %v18_v12  ;;  %v713_v52 = vmul.f32 %v2932_v57, %v401_v38  ;;  %v38_v56 = vld [vmem:[%s4055_s2 + $0xb8] sm:$0xff]  ;;  %v29_v58 = vld [vmem:[%s4055_s2 + $0x70] sm:$0xff] }
  0x97   :  { %v842_v3 = vpack.c.bf16 %v712_v63, %v702_v62  ;;  %v834_v14 = vpack.c.bf16 %v694_v31, %v684_v0  ;;  %v34_v59 = vld [vmem:[%s4055_s2 + $0x98] sm:$0xff]  ;;  %v155_v63 = vunpack.c.l.bf16 %v19_v32  ;;  %v176_v11 = vunpack.c.h.bf16 %v29_v58 }
  0x98   :  { %v465_v49 = vmul.f32 %v3465_v34, %v153_v30  ;;  %v193_v23 = vunpack.c.l.bf16 %v38_v56 }
  0x99   :  { %v467_v9 = vmul.f32 %v2348_v37, %v155_v63  ;;  %v488_v17 = vmul.f32 %v2366_v43, %v176_v11  ;;  %v59_v11 = vld [vmem:[%s4055_s2 + $0x160] sm:$0xff] }
  0x9a   :  { %v725_v62 = vpack.c.bf16 %v475_v50, %v465_v49 }
  0x9c   :  { %1365 = vmatmul.mubr.bf16.gmra.mxu1 %v811_v4  ;;  %1494 = vmatmul.mubr.bf16.gmra.mxu0 %v803_v6  ;;  %v402_v4 = vunpack.c.h.bf16 %v142_v8  ;;  %v154_v6 = vunpack.c.h.bf16 %v18_v12 }
  0x9d   :  { %1372 = vmatprep.mubr.bf16.mxu1 %v822_v20  ;;  %1501 = vmatprep.mubr.bf16.mxu0 %v814_v21  ;;  %v3442_v20 = vrot.slane %v2245_v19, %v439_v2  ;;  %v683_v21 = vmul.f32 %v2932_v57, %v371_v60  ;;  %v183_v2 = vunpack.c.l.bf16 %v33_v36  ;;  %v485_v60 = vmul.f32 %v3465_v34, %v173_v1  ;;  %v39_v19 = vld [vmem:[%s4055_s2 + $0xc0] sm:$0xff] }
  0x9e   :  { %v714_v27 = vmul.f32 %v2899_v40, %v402_v4  ;;  %v24_v40 = vld [vmem:[%s4055_s2 + $0x48] sm:$0xff]  ;;  %v196_v30 = vunpack.c.h.bf16 %v39_v19 }
  0x9f   :  { %v466_v28 = vmul.f32 %v3442_v20, %v154_v6  ;;  %v476_v29 = vmul.f32 %v3442_v20, %v164_v18  ;;  %v833_v41 = vpack.c.bf16 %v693_v25, %v683_v21  ;;  %v166_v48 = vunpack.c.h.bf16 %v24_v40  ;;  %v48_v6 = vld [vmem:[%s4055_s2 + $0x108] sm:$0xff]  ;;  %v53_v18 = vld [vmem:[%s4055_s2 + $0x130] sm:$0xff] }
  0xa0   :  { %v844_v45 = vpack.c.bf16 %v714_v27, %v704_v26  ;;  %v486_v5 = vmul.f32 %v3442_v20, %v174_v42  ;;  %v496_v53 = vmul.f32 %v3442_v20, %v184_v44  ;;  %v165_v0 = vunpack.c.l.bf16 %v24_v40 }
  0xa1   :  { %v726_v46 = vpack.c.bf16 %v476_v29, %v466_v28  ;;  %v175_v21 = vunpack.c.l.bf16 %v29_v58  ;;  %v185_v25 = vunpack.c.l.bf16 %v34_v59  ;;  %v214_v28 = vunpack.c.h.bf16 %v48_v6 }
  0xa2   :  { %v736_v31 = vpack.c.bf16 %v496_v53, %v486_v5  ;;  %v477_v10 = vmul.f32 %v2348_v37, %v165_v0  ;;  %v224_v29 = vunpack.c.h.bf16 %v53_v18  ;;  %v505_v40 = vmul.f32 %v3465_v34, %v193_v23 }
  0xa3   :  { %v497_v38 = vmul.f32 %v2348_v37, %v185_v25  ;;  %v508_v42 = vmul.f32 %v2366_v43, %v196_v30  ;;  %v195_v53 = vunpack.c.l.bf16 %v39_v19  ;;  %v236_v19 = vunpack.c.h.bf16 %v59_v11  ;;  %v69_v30 = vld [vmem:[%s4055_s2 + $0x1b0] sm:$0xff] }
  0xa4   :  { %1373 = vmatmul.mubr.bf16.gmra.mxu1 %v821_v47  ;;  %1502 = vmatmul.mubr.bf16.gmra.mxu0 %v813_v51  ;;  %v156_v47 = vunpack.c.h.bf16 %v19_v32  ;;  %v703_v51 = vmul.f32 %v2932_v57, %v391_v35  ;;  %v43_v57 = vld [vmem:[%s4055_s2 + $0xe0] sm:$0xff]  ;;  %v727_v27 = vpack.c.bf16 %v477_v10, %v467_v9  ;;  %v206_v32 = vunpack.c.h.bf16 %v44_v22 }
  0xa5   :  { %1380 = vmatprep.mubr.bf16.mxu1 %v832_v54  ;;  %1509 = vmatprep.mubr.bf16.mxu0 %v824_v55  ;;  %v478_v55 = vmul.f32 %v2366_v43, %v166_v48  ;;  %v204_v12 = vunpack.c.h.bf16 %v43_v57  ;;  %v203_v24 = vunpack.c.l.bf16 %v43_v57  ;;  %v487_v35 = vmul.f32 %v2348_v37, %v175_v21  ;;  %v54_v48 = vld [vmem:[%s4055_s2 + $0x138] sm:$0xff] }
  0xa6   :  { %v468_v54 = vmul.f32 %v2366_v43, %v156_v47  ;;  %v843_v61 = vpack.c.bf16 %v713_v52, %v703_v51  ;;  %v518_v44 = vmul.f32 %v2366_v43, %v206_v32  ;;  %v49_v47 = vld [vmem:[%s4055_s2 + $0x110] sm:$0xff]  ;;  %v213_v51 = vunpack.c.l.bf16 %v48_v6  ;;  %v74_v32 = vld [vmem:[%s4055_s2 + $0x1d8] sm:$0xff] }
  0xa7   :  { %v516_v16 = vmul.f32 %v3442_v20, %v204_v12  ;;  %v515_v33 = vmul.f32 %v3465_v34, %v203_v24  ;;  %v737_v50 = vpack.c.bf16 %v497_v38, %v487_v35  ;;  %v223_v52 = vunpack.c.l.bf16 %v53_v18  ;;  %v73_v12 = vld [vmem:[%s4055_s2 + $0x1d0] sm:$0xff] }
  0xa8   :  { %v728_v8 = vpack.c.bf16 %v478_v55, %v468_v54  ;;  %v205_v54 = vunpack.c.l.bf16 %v44_v22  ;;  %v216_v58 = vunpack.c.h.bf16 %v49_v47  ;;  %v507_v63 = vmul.f32 %v2348_v37, %v195_v53 }
  0xa9   :  { %v745_v49 = vpack.c.bf16 %v515_v33, %v505_v40  ;;  %v263_v38 = vunpack.c.l.bf16 %v73_v12 }
  0xaa   :  { %v517_v0 = vmul.f32 %v2348_v37, %v205_v54 }
  0xac   :  { %1381 = vmatmul.mubr.bf16.gmra.mxu1 %v831_v7  ;;  %1510 = vmatmul.mubr.bf16.gmra.mxu0 %v823_v13  ;;  %v194_v7 = vunpack.c.h.bf16 %v38_v56  ;;  %v186_v13 = vunpack.c.h.bf16 %v34_v59  ;;  %v748_v56 = vpack.c.bf16 %v518_v44, %v508_v42  ;;  %v226_v59 = vunpack.c.h.bf16 %v54_v48 }
  0xad   :  { %1388 = vmatprep.mubr.bf16.mxu1 %v842_v3  ;;  %1517 = vmatprep.mubr.bf16.mxu0 %v834_v14  ;;  %v495_v3 = vmul.f32 %v3465_v34, %v183_v2  ;;  %v528_v2 = vmul.f32 %v2366_v43, %v216_v58 }
  0xae   :  { %v506_v14 = vmul.f32 %v3442_v20, %v194_v7  ;;  %v498_v4 = vmul.f32 %v2366_v43, %v186_v13  ;;  %v538_v7 = vmul.f32 %v2366_v43, %v226_v59  ;;  %v64_v13 = vld [vmem:[%s4055_s2 + $0x188] sm:$0xff] }
  0xaf   :  { %v735_v26 = vpack.c.bf16 %v495_v3, %v485_v60  ;;  %v215_v60 = vunpack.c.l.bf16 %v49_v47  ;;  %v225_v3 = vunpack.c.l.bf16 %v54_v48  ;;  %v246_v22 = vunpack.c.h.bf16 %v64_v13 }
  0xb0   :  { %v746_v15 = vpack.c.bf16 %v516_v16, %v506_v14  ;;  %v738_v36 = vpack.c.bf16 %v498_v4, %v488_v17  ;;  %v747_v16 = vpack.c.bf16 %v517_v0, %v507_v63  ;;  %v264_v4 = vunpack.c.h.bf16 %v73_v12 }
  0xb1   :  { %v758_v18 = vpack.c.bf16 %v538_v7, %v528_v2  ;;  %v527_v21 = vmul.f32 %v2348_v37, %v215_v60  ;;  %v537_v25 = vmul.f32 %v2348_v37, %v225_v3  ;;  %v245_v42 = vunpack.c.l.bf16 %v64_v13 }
  0xb2   :  { %v256_v47 = vunpack.c.h.bf16 %v69_v30  ;;  %v266_v48 = vunpack.c.h.bf16 %v74_v32  ;;  %v255_v63 = vunpack.c.l.bf16 %v69_v30  ;;  %v265_v0 = vunpack.c.l.bf16 %v74_v32 }
  0xb3   :  { %v757_v33 = vpack.c.bf16 %v537_v25, %v527_v21  ;;  %v103_v25 = vld [vmem:[%s4055_s2 + $0x2c0] sm:$0xff] }
  0xb4   :  { %1389 = vmatmul.mubr.bf16.gmra.mxu1 %v841_v39  ;;  %1518 = vmatmul.mubr.bf16.gmra.mxu0 %v833_v41  ;;  %v526_v39 = vmul.f32 %v3442_v20, %v214_v28  ;;  %v536_v41 = vmul.f32 %v3442_v20, %v224_v29  ;;  %v548_v28 = vmul.f32 %v2366_v43, %v236_v19  ;;  %v3604_v19 = vld [vmem:[%s4055_s2 + $0x298] sm:$0xff] }
  0xb5   :  { %1525 = vmatprep.mubr.bf16.mxu0 %v844_v45  ;;  %1566 = vmatprep.mubr.bf16.mxu1 %v726_v46  ;;  %v58_v45 = vld [vmem:[%s4055_s2 + $0x158] sm:$0xff]  ;;  %v63_v46 = vld [vmem:[%s4055_s2 + $0x180] sm:$0xff]  ;;  %v558_v29 = vmul.f32 %v2366_v43, %v246_v22  ;;  %v568_v54 = vmul.f32 %v2366_v43, %v256_v47  ;;  %v567_v60 = vmul.f32 %v2348_v37, %v255_v63  ;;  %v313_v63 = vunpack.c.l.bf16 %v3604_v19 }
  0xb6   :  { %v756_v5 = vpack.c.bf16 %v536_v41, %v526_v39  ;;  %v234_v55 = vunpack.c.h.bf16 %v58_v45  ;;  %v244_v57 = vunpack.c.h.bf16 %v63_v46  ;;  %v233_v9 = vunpack.c.l.bf16 %v58_v45 }
  0xb7   :  { %v243_v10 = vunpack.c.l.bf16 %v63_v46  ;;  %v235_v41 = vunpack.c.l.bf16 %v59_v11  ;;  %v768_v45 = vpack.c.bf16 %v558_v29, %v548_v28  ;;  %v577_v3 = vmul.f32 %v2348_v37, %v265_v0 }
  0xb8   :  { %v556_v1 = vmul.f32 %v3442_v20, %v244_v57  ;;  %v545_v23 = vmul.f32 %v3465_v34, %v233_v9  ;;  %v93_v57 = vld [vmem:[%s4055_s2 + $0x270] sm:$0xff]  ;;  %v323_v0 = vunpack.c.l.bf16 %v103_v25 }
  0xb9   :  { %v555_v24 = vmul.f32 %v3465_v34, %v243_v10  ;;  %v304_v7 = vunpack.c.h.bf16 %v93_v57 }
  0xbb   :  { %v765_v40 = vpack.c.bf16 %v555_v24, %v545_v23 }
  0xbc   :  { %1526 = vmatmul.mubr.bf16.gmra.mxu0 %v843_v61  ;;  %1567 = vmatmul.mubr.bf16.vlgmr.msra.gmra.mxu1 %v725_v62  ;;  %v525_v61 = vmul.f32 %v3465_v34, %v213_v51  ;;  %v535_v62 = vmul.f32 %v3465_v34, %v223_v52  ;;  %v547_v51 = vmul.f32 %v2348_v37, %v235_v41  ;;  %v324_v41 = vunpack.c.h.bf16 %v103_v25 }
  0xbd   :  { %1574 = vmatprep.mubr.bf16.mxu1 %v736_v31  ;;  %1839 = vmatprep.mubr.msk.bf16.mxu0 %vm1083_vm0, %v728_v8  ;;  %v546_v31 = vmul.f32 %v3442_v20, %v234_v55  ;;  %v68_v8 = vld [vmem:[%s4055_s2 + $0x1a8] sm:$0xff]  ;;  %v557_v52 = vmul.f32 %v2348_v37, %v245_v42  ;;  %v578_v55 = vmul.f32 %v2366_v43, %v266_v48 }
  0xbe   :  { %v755_v14 = vpack.c.bf16 %v535_v62, %v525_v61  ;;  %v254_v17 = vunpack.c.h.bf16 %v68_v8  ;;  %v253_v35 = vunpack.c.l.bf16 %v68_v8  ;;  %v79_v61 = vld [vmem:[%s4055_s2 + $0x200] sm:$0xff]  ;;  %v84_v62 = vld [vmem:[%s4055_s2 + $0x228] sm:$0xff] }
  0xbf   :  { %v766_v6 = vpack.c.bf16 %v556_v1, %v546_v31  ;;  %v767_v1 = vpack.c.bf16 %v557_v52, %v547_v51  ;;  %v778_v12 = vpack.c.bf16 %v578_v55, %v568_v54  ;;  %v276_v11 = vunpack.c.h.bf16 %v79_v61 }
  0xc0   :  { %v286_v13 = vunpack.c.h.bf16 %v84_v62  ;;  %v636_v55 = vmul.f32 %v3442_v20, %v324_v41  ;;  %v123_v41 = vld [vmem:[%s4055_s2 + $0x360] sm:$0xff] }
  0xc4   :  { %1575 = vmatmul.mubr.bf16.gmra.mxu1 %v735_v26  ;;  %1704 = vmatmul.mubr.bf16.vlgmr.msra.gmra.mxu0 %v727_v27  ;;  %v566_v26 = vmul.f32 %v3442_v20, %v254_v17  ;;  %v576_v27 = vmul.f32 %v3442_v20, %v264_v4  ;;  %v616_v4 = vmul.f32 %v3442_v20, %v304_v7 }
  0xc5   :  { %1582 = vmatprep.mubr.bf16.mxu1 %v746_v15  ;;  %1840 = vmatprep.mubr.msk.bf16.mxu0 %vm1083_vm0, %v738_v36  ;;  %v78_v15 = vld [vmem:[%s4055_s2 + $0x1f8] sm:$0xff]  ;;  %v83_v36 = vld [vmem:[%s4055_s2 + $0x220] sm:$0xff] }
  0xc6   :  { %v776_v39 = vpack.c.bf16 %v576_v27, %v566_v26  ;;  %v274_v44 = vunpack.c.h.bf16 %v78_v15  ;;  %v284_v46 = vunpack.c.h.bf16 %v83_v36  ;;  %v273_v58 = vunpack.c.l.bf16 %v78_v15  ;;  %v3612_v26 = vld [vmem:[%s4055_s2 + $0x250] sm:$0xff]  ;;  %v3617_v27 = vld [vmem:[%s4055_s2 + $0x278] sm:$0xff] }
  0xc7   :  { %v283_v59 = vunpack.c.l.bf16 %v83_v36  ;;  %v777_v15 = vpack.c.bf16 %v577_v3, %v567_v60  ;;  %v303_v36 = vunpack.c.l.bf16 %v93_v57  ;;  %v296_v42 = vunpack.c.h.bf16 %v3612_v26 }
  0xc8   :  { %v596_v53 = vmul.f32 %v3442_v20, %v284_v46  ;;  %v585_v9 = vmul.f32 %v3465_v34, %v273_v58  ;;  %v3642_v58 = vld [vmem:[%s4055_s2 + $0x2e8] sm:$0xff] }
  0xc9   :  { %v595_v10 = vmul.f32 %v3465_v34, %v283_v59  ;;  %v3647_v59 = vld [vmem:[%s4055_s2 + $0x310] sm:$0xff]  ;;  %v334_v60 = vunpack.c.h.bf16 %v3642_v58 }
  0xca   :  { %v344_v3 = vunpack.c.h.bf16 %v3647_v59 }
  0xcb   :  { %v785_v24 = vpack.c.bf16 %v595_v10, %v585_v9 }
  0xcc   :  { %1583 = vmatmul.mubr.bf16.gmra.mxu1 %v745_v49  ;;  %1712 = vmatmul.mubr.bf16.gmra.mxu0 %v737_v50  ;;  %v565_v49 = vmul.f32 %v3465_v34, %v253_v35  ;;  %v575_v50 = vmul.f32 %v3465_v34, %v263_v38  ;;  %v285_v35 = vunpack.c.l.bf16 %v84_v62  ;;  %v314_v38 = vunpack.c.h.bf16 %v3604_v19 }
  0xcd   :  { %1590 = vmatprep.mubr.bf16.mxu1 %v756_v5  ;;  %1841 = vmatprep.mubr.msk.bf16.mxu0 %vm1083_vm0, %v748_v56  ;;  %v586_v5 = vmul.f32 %v3442_v20, %v274_v44  ;;  %v88_v56 = vld [vmem:[%s4055_s2 + $0x248] sm:$0xff]  ;;  %v306_v44 = vunpack.c.h.bf16 %v3617_v27  ;;  %v625_v19 = vmul.f32 %v3465_v34, %v313_v63 }
  0xce   :  { %v775_v31 = vpack.c.bf16 %v575_v50, %v565_v49  ;;  %v294_v2 = vunpack.c.h.bf16 %v88_v56  ;;  %v293_v21 = vunpack.c.l.bf16 %v88_v56  ;;  %v615_v50 = vmul.f32 %v3465_v34, %v303_v36 }
  0xcf   :  { %v786_v8 = vpack.c.bf16 %v596_v53, %v586_v5  ;;  %v597_v53 = vmul.f32 %v2348_v37, %v285_v35  ;;  %v626_v54 = vmul.f32 %v3442_v20, %v314_v38  ;;  %v608_v56 = vmul.f32 %v2366_v43, %v296_v42  ;;  %v3695_v42 = vld [vmem:[%s4055_s2 + $0x2f0] sm:$0xff] }
  0xd0   :  { %v606_v17 = vmul.f32 %v3442_v20, %v294_v2  ;;  %v605_v49 = vmul.f32 %v3465_v34, %v293_v21  ;;  %v618_v57 = vmul.f32 %v2366_v43, %v306_v44  ;;  %v656_v36 = vmul.f32 %v3442_v20, %v344_v3  ;;  %v3700_v44 = vld [vmem:[%s4055_s2 + $0x318] sm:$0xff] }
  0xd2   :  { %v795_v9 = vpack.c.bf16 %v615_v50, %v605_v49  ;;  %v343_v50 = vunpack.c.l.bf16 %v3647_v59 }
  0xd4   :  { %1591 = vmatmul.mubr.bf16.gmra.mxu1 %v755_v14  ;;  %1720 = vmatmul.mubr.bf16.gmra.mxu0 %v747_v16 }
  0xd5   :  { %1598 = vmatprep.mubr.bf16.mxu1 %v766_v6  ;;  %1842 = vmatprep.mubr.msk.bf16.mxu0 %vm1083_vm0, %v758_v18  ;;  %v588_v6 = vmul.f32 %v2366_v43, %v276_v11  ;;  %v598_v18 = vmul.f32 %v2366_v43, %v286_v13 }
  0xdc   :  { %1599 = vmatmul.mubr.bf16.gmra.mxu1 %v765_v40  ;;  %1728 = vmatmul.mubr.bf16.gmra.mxu0 %v757_v33  ;;  %v796_v40 = vpack.c.bf16 %v616_v4, %v606_v17  ;;  %v275_v33 = vunpack.c.l.bf16 %v79_v61 }
  0xdd   :  { %1606 = vmatprep.mubr.bf16.mxu1 %v776_v39  ;;  %1843 = vmatprep.mubr.msk.bf16.mxu0 %vm1083_vm0, %v768_v45  ;;  %v788_v39 = vpack.c.bf16 %v598_v18, %v588_v6 }
  0xde   :  { %v587_v5 = vmul.f32 %v2348_v37, %v275_v33 }
  0xe0   :  { %v787_v10 = vpack.c.bf16 %v597_v53, %v587_v5 }
  0xe4   :  { %v1868_v14 = vpop.f32.mrf.mxu0  ;;  %v1910_v16 = vpop.f32.mrf.mxu1  ;;  %1607 = vmatmul.mubr.bf16.gmra.mxu1 %v775_v31  ;;  %1736 = vmatmul.mubr.bf16.gmra.mxu0 %v767_v1  ;;  %v3653_v31 = vld [vmem:[%s4055_s2 + $0x2a0] sm:$0xff]  ;;  %v3658_v1 = vld [vmem:[%s4055_s2 + $0x2c8] sm:$0xff] }
  0xe5   :  { %1614 = vmatprep.mubr.bf16.mxu1 %v786_v8  ;;  %1844 = vmatprep.mubr.msk.bf16.mxu0 %vm1083_vm0, %v778_v12  ;;  %v295_v8 = vunpack.c.l.bf16 %v3612_v26  ;;  %v305_v12 = vunpack.c.l.bf16 %v3617_v27  ;;  %v316_v17 = vunpack.c.h.bf16 %v3653_v31  ;;  %v326_v4 = vunpack.c.h.bf16 %v3658_v1 }
  0xe6   :  { %v1869_v22 = vpop.f32.mrf.mxu0  ;;  %v1911_v23 = vpop.f32.mrf.mxu1  ;;  %v315_v53 = vunpack.c.l.bf16 %v3653_v31  ;;  %v655_v31 = vmul.f32 %v3465_v34, %v343_v50 }
  0xe7   :  { %v3619_v28 = vadd.f32 %v1869_v22, %v1868_v14  ;;  %v3621_v29 = vadd.f32 %v1911_v23, %v1910_v16  ;;  %v806_v14 = vpack.c.bf16 %v636_v55, %v626_v54  ;;  %v798_v16 = vpack.c.bf16 %v618_v57, %v608_v56 }
  0xe8   :  { %v1871_v30 = vpop.f32.mrf.mxu0  ;;  %v1913_v32 = vpop.f32.mrf.mxu1  ;;  %v635_v22 = vmul.f32 %v3465_v34, %v323_v0  ;;  %v607_v21 = vmul.f32 %v2348_v37, %v295_v8  ;;  %v617_v25 = vmul.f32 %v2348_v37, %v305_v12  ;;  %v325_v54 = vunpack.c.l.bf16 %v3658_v1 }
  0xe9   :  { %v364_v57 = vunpack.c.h.bf16 %v123_v41 }
  0xea   :  { %v1872_v45 = vpop.f32.mrf.mxu0  ;;  %v1914_v46 = vpop.f32.mrf.mxu1  ;;  %v805_v38 = vpack.c.bf16 %v635_v22, %v625_v19  ;;  %v797_v49 = vpack.c.bf16 %v617_v25, %v607_v21  ;;  %v3739_v19 = vld [vmem:[%s4055_s2 + $0x340] sm:$0xff]  ;;  %v3744_v22 = vld [vmem:[%s4055_s2 + $0x368] sm:$0xff] }
  0xeb   :  { %v3626_v47 = vadd.f32 %v1872_v45, %v1871_v30  ;;  %v3628_v48 = vadd.f32 %v1914_v46, %v1913_v32  ;;  %v628_v30 = vmul.f32 %v2366_v43, %v316_v17  ;;  %v638_v32 = vmul.f32 %v2366_v43, %v326_v4 }
  0xec   :  { %v1874_v51 = vpop.f32.mrf.mxu0  ;;  %v1916_v52 = vpop.f32.mrf.mxu1  ;;  %1615 = vmatmul.mubr.bf16.gmra.mxu1 %v785_v24  ;;  %1744 = vmatmul.mubr.bf16.gmra.mxu0 %v777_v15  ;;  %v646_v15 = vmul.f32 %v3442_v20, %v334_v60 }
  0xed   :  { %1622 = vmatprep.mubr.bf16.mxu1 %v796_v40  ;;  %1845 = vmatprep.mubr.msk.bf16.mxu0 %vm1083_vm0, %v788_v39  ;;  %v3686_v40 = vld [vmem:[%s4055_s2 + $0x338] sm:$0xff]  ;;  %v333_v39 = vunpack.c.l.bf16 %v3642_v58  ;;  %v808_v56 = vpack.c.bf16 %v638_v32, %v628_v30  ;;  %v336_v58 = vunpack.c.h.bf16 %v3695_v42 }
  0xee   :  { %v1875_v61 = vpop.f32.mrf.mxu0  ;;  %v1917_v62 = vpop.f32.mrf.mxu1  ;;  %v816_v5 = vpack.c.bf16 %v656_v36, %v646_v15  ;;  %v354_v55 = vunpack.c.h.bf16 %v3686_v40 }
  0xef   :  { %v3660_v2 = vadd.f32 %v1875_v61, %v1874_v51  ;;  %v3662_v7 = vadd.f32 %v1917_v62, %v1916_v52  ;;  %v346_v61 = vunpack.c.h.bf16 %v3700_v44  ;;  %v645_v8 = vmul.f32 %v3465_v34, %v333_v39 }
  0xf0   :  { %v1877_v11 = vpop.f32.mrf.mxu0  ;;  %v1919_v13 = vpop.f32.mrf.mxu1  ;;  %v648_v60 = vmul.f32 %v2366_v43, %v336_v58  ;;  %v356_v39 = vunpack.c.h.bf16 %v3739_v19 }
  0xf1   :  { %v658_v3 = vmul.f32 %v2366_v43, %v346_v61  ;;  %v815_v30 = vpack.c.bf16 %v655_v31, %v645_v8 }
  0xf2   :  { %v1878_v6 = vpop.f32.mrf.mxu0  ;;  %v1920_v18 = vpop.f32.mrf.mxu1  ;;  %v668_v58 = vmul.f32 %v2366_v43, %v356_v39 }
  0xf3   :  { %v3672_v23 = vadd.f32 %v1878_v6, %v1877_v11  ;;  %v3674_v24 = vadd.f32 %v1920_v18, %v1919_v13  ;;  %v627_v11 = vmul.f32 %v2348_v37, %v315_v53  ;;  %v637_v13 = vmul.f32 %v2348_v37, %v325_v54 }
  0xf4   :  { %v1880_v26 = vpop.f32.mrf.mxu0  ;;  %v1922_v27 = vpop.f32.mrf.mxu1  ;;  %1623 = vmatmul.mubr.bf16.gmra.mxu1 %v795_v9  ;;  %1752 = vmatmul.mubr.bf16.gmra.mxu0 %v787_v10  ;;  %v666_v9 = vmul.f32 %v3442_v20, %v354_v55  ;;  %v676_v10 = vmul.f32 %v3442_v20, %v364_v57  ;;  %v353_v6 = vunpack.c.l.bf16 %v3686_v40  ;;  %v363_v18 = vunpack.c.l.bf16 %v123_v41 }
  0xf5   :  { %1630 = vmatprep.mubr.bf16.mxu1 %v806_v14  ;;  %1846 = vmatprep.mubr.msk.bf16.mxu0 %vm1083_vm0, %v798_v16  ;;  %v3728_v14 = vld [vmem:[%s4055_s2 + $0x388] sm:$0xff]  ;;  %v3733_v16 = vld [vmem:[%s4055_s2 + $0x3b0] sm:$0xff]  ;;  %v807_v32 = vpack.c.bf16 %v637_v13, %v627_v11  ;;  %v366_v41 = vunpack.c.h.bf16 %v3744_v22  ;;  %v3788_v13 = vld [vmem:[%s4055_s2 + $0x3b8] sm:$0xff] }
  0xf6   :  { %v1881_v33 = vpop.f32.mrf.mxu0  ;;  %v1923_v35 = vpop.f32.mrf.mxu1  ;;  %v374_v40 = vunpack.c.h.bf16 %v3728_v14  ;;  %v3783_v11 = vld [vmem:[%s4055_s2 + $0x390] sm:$0xff] }
  0xf7   :  { %v3702_v45 = vadd.f32 %v1881_v33, %v1880_v26  ;;  %v3704_v46 = vadd.f32 %v1923_v35, %v1922_v27  ;;  %v335_v26 = vunpack.c.l.bf16 %v3695_v42  ;;  %v345_v27 = vunpack.c.l.bf16 %v3700_v44 }
  0xf8   :  { %v1883_v51 = vpop.f32.mrf.mxu0  ;;  %v1925_v52 = vpop.f32.mrf.mxu1  ;;  %v384_v33 = vunpack.c.h.bf16 %v3733_v16  ;;  %v826_v35 = vpack.c.bf16 %v676_v10, %v666_v9  ;;  %v665_v42 = vmul.f32 %v3465_v34, %v353_v6  ;;  %v675_v44 = vmul.f32 %v3465_v34, %v363_v18 }
  0xf9   :  { %v657_v53 = vmul.f32 %v2348_v37, %v345_v27  ;;  %v678_v61 = vmul.f32 %v2366_v43, %v366_v41  ;;  %v355_v6 = vunpack.c.l.bf16 %v3739_v19  ;;  %v365_v18 = vunpack.c.l.bf16 %v3744_v22 }
  0xfa   :  { %v1884_v62 = vpop.f32.mrf.mxu0  ;;  %v1926_v63 = vpop.f32.mrf.mxu1  ;;  %v696_v57 = vmul.f32 %v3442_v20, %v384_v33  ;;  %v825_v31 = vpack.c.bf16 %v675_v44, %v665_v42 }
  0xfb   :  { %v3712_v0 = vadd.f32 %v1884_v62, %v1883_v51  ;;  %v3714_v59 = vadd.f32 %v1926_v63, %v1925_v52  ;;  %v3772_v62 = vld [vmem:[%s4055_s2 + $0x3d8] sm:$0xff]  ;;  %v828_v27 = vpack.c.bf16 %v678_v61, %v668_v58  ;;  %v667_v39 = vmul.f32 %v2348_v37, %v355_v6 }
  0xfc   :  { %v1886_v12 = vpop.f32.mrf.mxu0  ;;  %v1928_v1 = vpop.f32.mrf.mxu1  ;;  %1631 = vmatmul.mubr.bf16.gmra.mxu1 %v805_v38  ;;  %1760 = vmatmul.mubr.bf16.gmra.mxu0 %v797_v49  ;;  %v818_v38 = vpack.c.bf16 %v658_v3, %v648_v60  ;;  %v383_v3 = vunpack.c.l.bf16 %v3733_v16  ;;  %v677_v41 = vmul.f32 %v2348_v37, %v365_v18 }
  0xfd   :  { %1638 = vmatprep.mubr.bf16.mxu1 %v816_v5  ;;  %1847 = vmatprep.mubr.msk.bf16.mxu0 %vm1083_vm0, %v808_v56  ;;  %v647_v5 = vmul.f32 %v2348_v37, %v335_v26  ;;  %v686_v56 = vmul.f32 %v3442_v20, %v374_v40  ;;  %v394_v26 = vunpack.c.h.bf16 %v3772_v62 }
  0xfe   :  { %v1887_v17 = vpop.f32.mrf.mxu0  ;;  %v1929_v4 = vpop.f32.mrf.mxu1  ;;  %v695_v19 = vmul.f32 %v3465_v34, %v383_v3 }
  0xff   :  { %v3746_v21 = vadd.f32 %v1887_v17, %v1886_v12  ;;  %v3748_v25 = vadd.f32 %v1929_v4, %v1928_v1  ;;  %v373_v12 = vunpack.c.l.bf16 %v3728_v14  ;;  %v3778_v1 = vld [vmem:[%s4055_s2 + $0x400] sm:$0xff]  ;;  %v817_v60 = vpack.c.bf16 %v657_v53, %v647_v5 }
 0x100   :  { %v1889_v15 = vpop.f32.mrf.mxu0  ;;  %v1931_v36 = vpop.f32.mrf.mxu1  ;;  %v836_v4 = vpack.c.bf16 %v696_v57, %v686_v56 }
 0x102   :  { %v1890_v49 = vpop.f32.mrf.mxu0  ;;  %v1932_v50 = vpop.f32.mrf.mxu1 }
 0x103   :  { %v3758_v51 = vadd.f32 %v1890_v49, %v1889_v15  ;;  %v3760_v52 = vadd.f32 %v1932_v50, %v1931_v36  ;;  %v404_v15 = vunpack.c.h.bf16 %v3778_v1  ;;  %v376_v36 = vunpack.c.h.bf16 %v3783_v11 }
 0x104   :  { %v1892_v54 = vpop.f32.mrf.mxu0  ;;  %v1934_v55 = vpop.f32.mrf.mxu1  ;;  %1639 = vmatmul.mubr.bf16.gmra.mxu1 %v815_v30  ;;  %1768 = vmatmul.mubr.bf16.gmra.mxu0 %v807_v32  ;;  %v386_v30 = vunpack.c.h.bf16 %v3788_v13  ;;  %v706_v49 = vmul.f32 %v3442_v20, %v394_v26 }
 0x105   :  { %1646 = vmatprep.mubr.bf16.mxu1 %v826_v35  ;;  %1848 = vmatprep.mubr.msk.bf16.mxu0 %vm1083_vm0, %v818_v38  ;;  %v685_v35 = vmul.f32 %v3465_v34, %v373_v12  ;;  %v716_v50 = vmul.f32 %v3442_v20, %v404_v15  ;;  %v688_v42 = vmul.f32 %v2366_v43, %v376_v36  ;;  %v393_v20 = vunpack.c.l.bf16 %v3772_v62 }
 0x106   :  { %v1893_v63 = vpop.f32.mrf.mxu0  ;;  %v1935_v8 = vpop.f32.mrf.mxu1  ;;  %v698_v44 = vmul.f32 %v2366_v43, %v386_v30  ;;  %v375_v12 = vunpack.c.l.bf16 %v3783_v11 }
 0x107   :  { %v3790_v9 = vadd.f32 %v1893_v63, %v1892_v54  ;;  %v3792_v10 = vadd.f32 %v1935_v8, %v1934_v55  ;;  %v139_v54 = vld [vmem:[%s4055_s2 + $0x3e0] sm:$0xff]  ;;  %v144_v55 = vld [vmem:[%s4055_s2 + $0x408] sm:$0xff]  ;;  %v835_v58 = vpack.c.bf16 %v695_v19, %v685_v35  ;;  %v827_v8 = vpack.c.bf16 %v677_v41, %v667_v39 }
 0x108   :  { %v1895_v14 = vpop.f32.mrf.mxu0  ;;  %v1937_v17 = vpop.f32.mrf.mxu1  ;;  %v846_v3 = vpack.c.bf16 %v716_v50, %v706_v49  ;;  %v705_v62 = vmul.f32 %v3465_v34, %v393_v20  ;;  %v687_v11 = vmul.f32 %v2348_v37, %v375_v12  ;;  %v395_v49 = vunpack.c.l.bf16 %v139_v54 }
 0x109   :  { %v405_v50 = vunpack.c.l.bf16 %v144_v55 }
 0x10a   :  { %v1896_v32 = vpop.f32.mrf.mxu0  ;;  %v1938_v40 = vpop.f32.mrf.mxu1 }
 0x10b   :  { %v3801_v33 = vadd.f32 %v1896_v32, %v1895_v14  ;;  %v3803_v16 = vadd.f32 %v1938_v40, %v1937_v17  ;;  %v838_v14 = vpack.c.bf16 %v698_v44, %v688_v42  ;;  %v396_v17 = vunpack.c.h.bf16 %v139_v54 }
 0x10c   :  { %v1898_v22 = vpop.f32.mrf.mxu0  ;;  %v1940_v38 = vpop.f32.mrf.mxu1  ;;  %1647 = vmatmul.mubr.bf16.gmra.mxu1 %v825_v31  ;;  %1776 = vmatmul.mubr.bf16.gmra.mxu0 %v817_v60  ;;  %v403_v31 = vunpack.c.l.bf16 %v3778_v1  ;;  %v385_v60 = vunpack.c.l.bf16 %v3788_v13 }
 0x10d   :  { %1654 = vmatprep.mubr.bf16.mxu1 %v836_v4  ;;  %1849 = vmatprep.mubr.msk.bf16.mxu0 %vm1083_vm0, %v828_v27  ;;  %v406_v4 = vunpack.c.h.bf16 %v144_v55  ;;  %v708_v30 = vmul.f32 %v2366_v43, %v396_v17 }
 0x10e   :  { %v1899_v5 = vpop.f32.mrf.mxu0  ;;  %v1941_v53 = vpop.f32.mrf.mxu1  ;;  %v715_v1 = vmul.f32 %v3465_v34, %v403_v31  ;;  %v697_v13 = vmul.f32 %v2348_v37, %v385_v60 }
 0x10f   :  { %v3820_v56 = vadd.f32 %v1899_v5, %v1898_v22  ;;  %v3822_v57 = vadd.f32 %v1941_v53, %v1940_v38  ;;  %v718_v32 = vmul.f32 %v2366_v43, %v406_v4 }
 0x110   :  { %v1901_v61 = vpop.f32.mrf.mxu0  ;;  %v1943_v63 = vpop.f32.mrf.mxu1  ;;  %v845_v41 = vpack.c.bf16 %v715_v1, %v705_v62  ;;  %v837_v34 = vpack.c.bf16 %v697_v13, %v687_v11 }
 0x111   :  { %v848_v44 = vpack.c.bf16 %v718_v32, %v708_v30 }
 0x112   :  { %v1902_v6 = vpop.f32.mrf.mxu0  ;;  %v1944_v18 = vpop.f32.mrf.mxu1 }
 0x113   :  { %v3828_v26 = vadd.f32 %v1902_v6, %v1901_v61  ;;  %v3830_v27 = vadd.f32 %v1944_v18, %v1943_v63  ;;  %v707_v63 = vmul.f32 %v2348_v37, %v395_v49 }
 0x114   :  { %v1904_v15 = vpop.f32.mrf.mxu0  ;;  %v1962_v36 = vpop.f32.mrf.mxu1  ;;  %1655 = vmatmul.mubr.bf16.gmra.mxu1 %v835_v58  ;;  %1784 = vmatmul.mubr.bf16.gmra.mxu0 %v827_v8  ;;  %v717_v8 = vmul.f32 %v2348_v37, %v405_v50 }
 0x115   :  { %1662 = vmatprep.mubr.bf16.mxu1 %v846_v3  ;;  %1850 = vmatprep.mubr.msk.bf16.mxu0 %vm1083_vm0, %v838_v14 }
 0x116   :  { %v1905_v40 = vpop.f32.mrf.mxu0  ;;  %v1963_v35 = vpop.f32.mrf.mxu1  ;;  %v847_v14 = vpack.c.bf16 %v717_v8, %v707_v63 }
 0x117   :  { %v3839_v19 = vadd.f32 %v1905_v40, %v1904_v15  ;;  %v1964_v22 = vadd.f32 %v1963_v35, %v1962_v36 }
 0x118   :  { %v1907_v38 = vpop.f32.mrf.mxu0  ;;  %v1965_v39 = vpop.f32.mrf.mxu1 }
 0x119   :  { %v1295_v42 = vadd.f32 %v1964_v22, %v3619_v28 }
 0x11a   :  { %v1908_v5 = vpop.f32.mrf.mxu0  ;;  %v1966_v53 = vpop.f32.mrf.mxu1 }
 0x11b   :  { %v3842_v58 = vadd.f32 %v1908_v5, %v1907_v38  ;;  %v1967_v20 = vadd.f32 %v1966_v53, %v1965_v39 }
 0x11c   :  { %v1968_v43 = vpop.f32.mrf.mxu1  ;;  %v2056_v61 = vpop.f32.mrf.mxu0  ;;  %1663 = vmatmul.mubr.bf16.gmra.mxu1 %v845_v41  ;;  %1792 = vmatmul.mubr.bf16.gmra.mxu0 %v837_v34 }
 0x11d   :  { %v1298_v31 = vadd.f32 %v1967_v20, %v3626_v47  ;;  %1851 = vmatprep.mubr.msk.bf16.mxu0 %vm1083_vm0, %v848_v44 }
 0x11e   :  { %v1969_v54 = vpop.f32.mrf.mxu1  ;;  %v2057_v28 = vpop.f32.mrf.mxu0 }
 0x11f   :  { %v1970_v55 = vadd.f32 %v1969_v54, %v1968_v43  ;;  %v2058_v12 = vadd.f32 %v2057_v28, %v2056_v61 }
 0x120   :  { %v1971_v60 = vpop.f32.mrf.mxu1  ;;  %v2059_v3 = vpop.f32.mrf.mxu0 }
 0x121   :  { %v1303_v17 = vadd.f32 %v1970_v55, %v3660_v2  ;;  %v3849_v4 = vadd.f32 %v2058_v12, %v1295_v42 }
 0x122   :  { %v1972_v6 = vpop.f32.mrf.mxu1  ;;  %v2060_v18 = vpop.f32.mrf.mxu0 }
 0x123   :  { %v1973_v62 = vadd.f32 %v1972_v6, %v1971_v60  ;;  %v2061_v15 = vadd.f32 %v2060_v18, %v2059_v3 }
 0x124   :  { %v1974_v37 = vpop.f32.mrf.mxu1  ;;  %v2062_v36 = vpop.f32.mrf.mxu0  ;;  %1800 = vmatmul.mubr.bf16.gmra.mxu0 %v847_v14 }
 0x125   :  { %v1306_v47 = vadd.f32 %v1973_v62, %v3672_v23  ;;  %v3852_v1 = vadd.f32 %v2061_v15, %v1298_v31 }
 0x126   :  { %v1975_v11 = vpop.f32.mrf.mxu1  ;;  %v2063_v13 = vpop.f32.mrf.mxu0 }
 0x127   :  { %v1976_v30 = vadd.f32 %v1975_v11, %v1974_v37  ;;  %v2064_v32 = vadd.f32 %v2063_v13, %v2062_v36 }
 0x128   :  { %v1977_v40 = vpop.f32.mrf.mxu1  ;;  %v2065_v35 = vpop.f32.mrf.mxu0 }
 0x129   :  { %v1311_v2 = vadd.f32 %v1976_v30, %v3702_v45  ;;  %v3855_v22 = vadd.f32 %v2064_v32, %v1303_v17 }
 0x12a   :  { %v1978_v38 = vpop.f32.mrf.mxu1  ;;  %v2066_v39 = vpop.f32.mrf.mxu0 }
 0x12b   :  { %v1979_v41 = vadd.f32 %v1978_v38, %v1977_v40  ;;  %v2067_v34 = vadd.f32 %v2066_v39, %v2065_v35 }
 0x12c   :  { %v1980_v49 = vpop.f32.mrf.mxu1  ;;  %v2068_v50 = vpop.f32.mrf.mxu0 }
 0x12d   :  { %v1314_v23 = vadd.f32 %v1979_v41, %v3712_v0  ;;  %v3858_v42 = vadd.f32 %v2067_v34, %v1306_v47 }
 0x12e   :  { %v1981_v44 = vpop.f32.mrf.mxu1  ;;  %v2069_v5 = vpop.f32.mrf.mxu0 }
 0x12f   :  { %v1982_v53 = vadd.f32 %v1981_v44, %v1980_v49  ;;  %v2070_v20 = vadd.f32 %v2069_v5, %v2068_v50 }
 0x130   :  { %v1983_v43 = vpop.f32.mrf.mxu1  ;;  %v2071_v61 = vpop.f32.mrf.mxu0 }
 0x131   :  { %v1319_v45 = vadd.f32 %v1982_v53, %v3746_v21  ;;  %v3861_v63 = vadd.f32 %v2070_v20, %v1311_v2 }
 0x132   :  { %v1984_v8 = vpop.f32.mrf.mxu1  ;;  %v2072_v31 = vpop.f32.mrf.mxu0 }
 0x133   :  { %v1985_v54 = vadd.f32 %v1984_v8, %v1983_v43  ;;  %v2073_v28 = vadd.f32 %v2072_v31, %v2071_v61 }
 0x134   :  { %v1986_v55 = vpop.f32.mrf.mxu1  ;;  %v2074_v12 = vpop.f32.mrf.mxu0 }
 0x135   :  { %v1322_v0 = vadd.f32 %v1985_v54, %v3758_v51  ;;  %v3864_v60 = vadd.f32 %v2073_v28, %v1314_v23 }
 0x136   :  { %v1987_v3 = vpop.f32.mrf.mxu1  ;;  %v2075_v14 = vpop.f32.mrf.mxu0 }
 0x137   :  { %v1988_v17 = vadd.f32 %v1987_v3, %v1986_v55  ;;  %v2076_v6 = vadd.f32 %v2075_v14, %v2074_v12 }
 0x138   :  { %v1989_v18 = vpop.f32.mrf.mxu1  ;;  %v2077_v62 = vpop.f32.mrf.mxu0 }
 0x139   :  { %v1327_v21 = vadd.f32 %v1988_v17, %v3790_v9  ;;  %v3867_v15 = vadd.f32 %v2076_v6, %v1319_v45 }
 0x13a   :  { %v1990_v37 = vpop.f32.mrf.mxu1  ;;  %v2078_v36 = vpop.f32.mrf.mxu0 }
 0x13b   :  { %v1991_v47 = vadd.f32 %v1990_v37, %v1989_v18  ;;  %v2079_v11 = vadd.f32 %v2078_v36, %v2077_v62 }
 0x13c   :  { %v1992_v13 = vpop.f32.mrf.mxu1  ;;  %v2080_v30 = vpop.f32.mrf.mxu0 }
 0x13d   :  { %v1330_v51 = vadd.f32 %v1991_v47, %v3801_v33  ;;  %v3870_v32 = vadd.f32 %v2079_v11, %v1322_v0 }
 0x13e   :  { %v1993_v40 = vpop.f32.mrf.mxu1  ;;  %v2081_v35 = vpop.f32.mrf.mxu0 }
 0x13f   :  { %v1994_v2 = vadd.f32 %v1993_v40, %v1992_v13  ;;  %v2082_v38 = vadd.f32 %v2081_v35, %v2080_v30 }
 0x140   :  { %v1995_v39 = vpop.f32.mrf.mxu1  ;;  %v2083_v41 = vpop.f32.mrf.mxu0 }
 0x141   :  { %v1335_v9 = vadd.f32 %v1994_v2, %v3820_v56  ;;  %v3873_v34 = vadd.f32 %v2082_v38, %v1327_v21 }
 0x142   :  { %v1996_v49 = vpop.f32.mrf.mxu1  ;;  %v2084_v50 = vpop.f32.mrf.mxu0 }
 0x143   :  { %v1997_v23 = vadd.f32 %v1996_v49, %v1995_v39  ;;  %v2085_v44 = vadd.f32 %v2084_v50, %v2083_v41 }
 0x144   :  { %v1998_v5 = vpop.f32.mrf.mxu1  ;;  %v2086_v53 = vpop.f32.mrf.mxu0 }
 0x145   :  { %v1338_v33 = vadd.f32 %v1997_v23, %v3828_v26  ;;  %v3876_v20 = vadd.f32 %v2085_v44, %v1330_v51 }
 0x146   :  { %v1999_v43 = vpop.f32.mrf.mxu1  ;;  %v2087_v61 = vpop.f32.mrf.mxu0 }
 0x147   :  { %v2000_v45 = vadd.f32 %v1999_v43, %v1998_v5  ;;  %v2088_v8 = vadd.f32 %v2087_v61, %v2086_v53 }
 0x148   :  { %v2001_v31 = vpop.f32.mrf.mxu1  ;;  %v2089_v54 = vpop.f32.mrf.mxu0 }
 0x149   :  { %v1343_v56 = vadd.f32 %v2000_v45, %v3839_v19  ;;  %v3879_v28 = vadd.f32 %v2088_v8, %v1335_v9 }
 0x14a   :  { %v2002_v55 = vpop.f32.mrf.mxu1  ;;  %v2090_v12 = vpop.f32.mrf.mxu0 }
 0x14b   :  { %v2003_v0 = vadd.f32 %v2002_v55, %v2001_v31  ;;  %v2091_v3 = vadd.f32 %v2090_v12, %v2089_v54 }
 0x14c   :  { %v2004_v14 = vpop.f32.mrf.mxu1  ;;  %v2092_v17 = vpop.f32.mrf.mxu0 }
 0x14d   :  { %v1346_v26 = vadd.f32 %v2003_v0, %v3842_v58  ;;  %v3882_v6 = vadd.f32 %v2091_v3, %v1338_v33 }
 0x14e   :  { %v2005_v18 = vpop.f32.mrf.mxu1  ;;  %v2093_v62 = vpop.f32.mrf.mxu0 }
 0x14f   :  { %v2006_v21 = vadd.f32 %v2005_v18, %v2004_v14  ;;  %v2094_v37 = vadd.f32 %v2093_v62, %v2092_v17 }
 0x150   :  { %v2007_v36 = vpop.f32.mrf.mxu1  ;;  %v2095_v47 = vpop.f32.mrf.mxu0 }
 0x151   :  { %v1351_v19 = vadd.f32 %v2006_v21, %v3621_v29  ;;  %v3885_v11 = vadd.f32 %v2094_v37, %v1343_v56 }
 0x152   :  { %v2008_v13 = vpop.f32.mrf.mxu1  ;;  %v2096_v30 = vpop.f32.mrf.mxu0 }
 0x153   :  { %v2009_v51 = vadd.f32 %v2008_v13, %v2007_v36  ;;  %v2097_v40 = vadd.f32 %v2096_v30, %v2095_v47 }
 0x154   :  { %v2010_v35 = vpop.f32.mrf.mxu1  ;;  %v2098_v2 = vpop.f32.mrf.mxu0 }
 0x155   :  { %v1354_v58 = vadd.f32 %v2009_v51, %v3628_v48  ;;  %v3888_v38 = vadd.f32 %v2097_v40, %v1346_v26 }
 0x156   :  { %v2011_v39 = vpop.f32.mrf.mxu1  ;;  %v2099_v41 = vpop.f32.mrf.mxu0 }
 0x157   :  { %v2012_v9 = vadd.f32 %v2011_v39, %v2010_v35  ;;  %v2100_v49 = vadd.f32 %v2099_v41, %v2098_v2 }
 0x158   :  { %v2013_v50 = vpop.f32.mrf.mxu1  ;;  %v2101_v23 = vpop.f32.mrf.mxu0 }
 0x159   :  { %v1359_v29 = vadd.f32 %v2012_v9, %v3662_v7  ;;  %v3891_v44 = vadd.f32 %v2100_v49, %v1351_v19 }
 0x15a   :  { %v2014_v5 = vpop.f32.mrf.mxu1  ;;  %v2102_v53 = vpop.f32.mrf.mxu0 }
 0x15b   :  { %v2015_v33 = vadd.f32 %v2014_v5, %v2013_v50  ;;  %v2103_v43 = vadd.f32 %v2102_v53, %v2101_v23 }
 0x15c   :  { %v2016_v61 = vpop.f32.mrf.mxu1  ;;  %v2104_v45 = vpop.f32.mrf.mxu0 }
 0x15d   :  { %v1362_v48 = vadd.f32 %v2015_v33, %v3674_v24  ;;  %v3894_v8 = vadd.f32 %v2103_v43, %v1354_v58 }
 0x15e   :  { %v2017_v31 = vpop.f32.mrf.mxu1  ;;  %v2105_v54 = vpop.f32.mrf.mxu0 }
 0x15f   :  { %v2018_v56 = vadd.f32 %v2017_v31, %v2016_v61  ;;  %v2106_v55 = vadd.f32 %v2105_v54, %v2104_v45 }
 0x160   :  { %v2019_v12 = vpop.f32.mrf.mxu1  ;;  %v2107_v0 = vpop.f32.mrf.mxu0 }
 0x161   :  { %v1367_v7 = vadd.f32 %v2018_v56, %v3704_v46  ;;  %v3897_v3 = vadd.f32 %v2106_v55, %v1359_v29 }
 0x162   :  { %v2020_v14 = vpop.f32.mrf.mxu1  ;;  %v2108_v17 = vpop.f32.mrf.mxu0 }
 0x163   :  { %v2021_v26 = vadd.f32 %v2020_v14, %v2019_v12  ;;  %v2109_v18 = vadd.f32 %v2108_v17, %v2107_v0 }
 0x164   :  { %v2022_v62 = vpop.f32.mrf.mxu1  ;;  %v2110_v21 = vpop.f32.mrf.mxu0 }
 0x165   :  { %v1370_v24 = vadd.f32 %v2021_v26, %v3714_v59  ;;  %v3900_v37 = vadd.f32 %v2109_v18, %v1362_v48 }
 0x166   :  { %v2023_v36 = vpop.f32.mrf.mxu1  ;;  %v2111_v47 = vpop.f32.mrf.mxu0 }
 0x167   :  { %v2024_v19 = vadd.f32 %v2023_v36, %v2022_v62  ;;  %v2112_v13 = vadd.f32 %v2111_v47, %v2110_v21 }
 0x168   :  { %v2025_v30 = vpop.f32.mrf.mxu1  ;;  %v2113_v51 = vpop.f32.mrf.mxu0 }
 0x169   :  { %v1375_v46 = vadd.f32 %v2024_v19, %v3748_v25  ;;  %v3903_v40 = vadd.f32 %v2112_v13, %v1367_v7 }
 0x16a   :  { %v2026_v35 = vpop.f32.mrf.mxu1  ;;  %v2114_v2 = vpop.f32.mrf.mxu0 }
 0x16b   :  { %v2027_v58 = vadd.f32 %v2026_v35, %v2025_v30  ;;  %v2115_v39 = vadd.f32 %v2114_v2, %v2113_v51 }
 0x16c   :  { %v2028_v41 = vpop.f32.mrf.mxu1  ;;  %v2116_v9 = vpop.f32.mrf.mxu0 }
 0x16d   :  { %v1378_v59 = vadd.f32 %v2027_v58, %v3760_v52  ;;  %v3906_v49 = vadd.f32 %v2115_v39, %v1370_v24 }
 0x16e   :  { %v2029_v50 = vpop.f32.mrf.mxu1  ;;  %v2117_v23 = vpop.f32.mrf.mxu0 }
 0x16f   :  { %v2030_v29 = vadd.f32 %v2029_v50, %v2028_v41  ;;  %v2118_v5 = vadd.f32 %v2117_v23, %v2116_v9 }
 0x170   :  { %v2031_v53 = vpop.f32.mrf.mxu1  ;;  %v2119_v33 = vpop.f32.mrf.mxu0 }
 0x171   :  { %v1383_v25 = vadd.f32 %v2030_v29, %v3792_v10  ;;  %v3909_v43 = vadd.f32 %v2118_v5, %v1375_v46 }
 0x172   :  { %v2032_v61 = vpop.f32.mrf.mxu1  ;;  %v2120_v45 = vpop.f32.mrf.mxu0 }
 0x173   :  { %v2033_v48 = vadd.f32 %v2032_v61, %v2031_v53  ;;  %v2121_v31 = vadd.f32 %v2120_v45, %v2119_v33 }
 0x174   :  { %v2034_v54 = vpop.f32.mrf.mxu1  ;;  %v2122_v56 = vpop.f32.mrf.mxu0 }
 0x175   :  { %v1386_v52 = vadd.f32 %v2033_v48, %v3803_v16  ;;  %v3912_v55 = vadd.f32 %v2121_v31, %v1378_v59 }
 0x176   :  { %v2035_v12 = vpop.f32.mrf.mxu1  ;;  %v2123_v0 = vpop.f32.mrf.mxu0 }
 0x177   :  { %v2036_v7 = vadd.f32 %v2035_v12, %v2034_v54  ;;  %v2124_v14 = vadd.f32 %v2123_v0, %v2122_v56 }
 0x178   :  { %v2037_v17 = vpop.f32.mrf.mxu1  ;;  %v2125_v26 = vpop.f32.mrf.mxu0 }
 0x179   :  { %v1391_v10 = vadd.f32 %v2036_v7, %v3822_v57  ;;  %v3915_v18 = vadd.f32 %v2124_v14, %v1383_v25 }
 0x17a   :  { %v2038_v62 = vpop.f32.mrf.mxu1  ;;  %v2126_v21 = vpop.f32.mrf.mxu0 }
 0x17b   :  { %v2039_v24 = vadd.f32 %v2038_v62, %v2037_v17  ;;  %v2127_v36 = vadd.f32 %v2126_v21, %v2125_v26 }
 0x17c   :  { %v2128_v47 = vpop.f32.mrf.mxu0  ;;  %v2150_v19 = vpop.f32.mrf.mxu1 }
 0x17d   :  { %v1394_v16 = vadd.f32 %v2039_v24, %v3830_v27  ;;  %v3918_v13 = vadd.f32 %v2127_v36, %v1386_v52 }
 0x17e   :  { %v2129_v30 = vpop.f32.mrf.mxu0  ;;  %v2151_v51 = vpop.f32.mrf.mxu1 }
 0x17f   :  { %v2130_v46 = vadd.f32 %v2129_v30, %v2128_v47  ;;  %v2152_v35 = vadd.f32 %v2151_v51, %v2150_v19 }
 0x180   :  { %v2131_v2 = vpop.f32.mrf.mxu0  ;;  %v2153_v58 = vpop.f32.mrf.mxu1 }
 0x181   :  { %v3920_v39 = vadd.f32 %v2130_v46, %v1391_v10  ;;  %v1569_v50 = vadd.f32 %v2152_v35, %v3849_v4 }
 0x182   :  { %v2132_v57 = vpop.f32.mrf.mxu0  ;;  %v2154_v41 = vpop.f32.mrf.mxu1 }
 0x183   :  { %v2133_v9 = vadd.f32 %v2132_v57, %v2131_v2  ;;  %v2155_v59 = vadd.f32 %v2154_v41, %v2153_v58 }
 0x184   :  { %v2156_v23 = vpop.f32.mrf.mxu1  ;;  %v1705_v29 = vpop.f32.mrf.mxu0 }
 0x185   :  { %v3923_v27 = vadd.f32 %v2133_v9, %v1394_v16  ;;  %v1706_v5 = vadd.f32 %v1705_v29, %v1569_v50  ;;  %v1572_v61 = vadd.f32 %v2155_v59, %v3852_v1 }
 0x186   :  { %v2157_v53 = vpop.f32.mrf.mxu1  ;;  %v1707_v33 = vpop.f32.mrf.mxu0 }
 0x187   :  { %1809 = vst.msk [vmem:[%s4057_s3] sm:$0xff] %vm1808_vm1, %v1706_v5  ;;  %v2158_v25 = vadd.f32 %v2157_v53, %v2156_v23 }
 0x188   :  { %v2159_v45 = vpop.f32.mrf.mxu1  ;;  %v1708_v48 = vpop.f32.mrf.mxu0 }
 0x189   :  { %v1709_v31 = vadd.f32 %v1708_v48, %v1572_v61  ;;  %v1577_v52 = vadd.f32 %v2158_v25, %v3855_v22 }
 0x18a   :  { %v2160_v4 = vpop.f32.mrf.mxu1  ;;  %v1710_v54 = vpop.f32.mrf.mxu0 }
 0x18b   :  { %1810 = vst.msk [vmem:[%s4057_s3 + $0x8] sm:$0xff] %vm1808_vm1, %v1709_v31  ;;  %v2161_v56 = vadd.f32 %v2160_v4, %v2159_v45 }
 0x18c   :  { %v2162_v12 = vpop.f32.mrf.mxu1  ;;  %v1713_v0 = vpop.f32.mrf.mxu0 }
 0x18d   :  { %v1714_v7 = vadd.f32 %v1713_v0, %v1577_v52  ;;  %v1580_v26 = vadd.f32 %v2161_v56, %v3858_v42 }
 0x18e   :  { %v2163_v14 = vpop.f32.mrf.mxu1  ;;  %v1715_v17 = vpop.f32.mrf.mxu0 }
 0x18f   :  { %1811 = vst.msk [vmem:[%s4057_s3 + $0x10] sm:$0xff] %vm1808_vm1, %v1714_v7  ;;  %v2164_v1 = vadd.f32 %v2163_v14, %v2162_v12 }
 0x190   :  { %v2165_v10 = vpop.f32.mrf.mxu1  ;;  %v1716_v62 = vpop.f32.mrf.mxu0 }
 0x191   :  { %v1717_v21 = vadd.f32 %v1716_v62, %v1580_v26  ;;  %v1585_v47 = vadd.f32 %v2164_v1, %v3861_v63 }
 0x192   :  { %v2166_v24 = vpop.f32.mrf.mxu1  ;;  %v1718_v36 = vpop.f32.mrf.mxu0 }
 0x193   :  { %1812 = vst.msk [vmem:[%s4057_s3 + $0x18] sm:$0xff] %vm1808_vm1, %v1717_v21  ;;  %v2167_v22 = vadd.f32 %v2166_v24, %v2165_v10 }
 0x194   :  { %v2168_v19 = vpop.f32.mrf.mxu1  ;;  %v1721_v16 = vpop.f32.mrf.mxu0 }
 0x195   :  { %v1722_v30 = vadd.f32 %v1721_v16, %v1585_v47  ;;  %v1588_v35 = vadd.f32 %v2167_v22, %v3864_v60 }
 0x196   :  { %v2169_v51 = vpop.f32.mrf.mxu1  ;;  %v1723_v46 = vpop.f32.mrf.mxu0 }
 0x197   :  { %1813 = vst.msk [vmem:[%s4057_s3 + $0x20] sm:$0xff] %vm1808_vm1, %v1722_v30  ;;  %v2170_v42 = vadd.f32 %v2169_v51, %v2168_v19 }
 0x198   :  { %v2171_v2 = vpop.f32.mrf.mxu1  ;;  %v1724_v58 = vpop.f32.mrf.mxu0 }
 0x199   :  { %v1725_v57 = vadd.f32 %v1724_v58, %v1588_v35  ;;  %v1593_v59 = vadd.f32 %v2170_v42, %v3867_v15 }
 0x19a   :  { %v2172_v41 = vpop.f32.mrf.mxu1  ;;  %v1726_v9 = vpop.f32.mrf.mxu0 }
 0x19b   :  { %1814 = vst.msk [vmem:[%s4057_s3 + $0x28] sm:$0xff] %vm1808_vm1, %v1725_v57  ;;  %v2173_v63 = vadd.f32 %v2172_v41, %v2171_v2 }
 0x19c   :  { %v2174_v50 = vpop.f32.mrf.mxu1  ;;  %v1729_v23 = vpop.f32.mrf.mxu0 }
 0x19d   :  { %v1730_v29 = vadd.f32 %v1729_v23, %v1593_v59  ;;  %v1596_v33 = vadd.f32 %v2173_v63, %v3870_v32 }
 0x19e   :  { %v2175_v5 = vpop.f32.mrf.mxu1  ;;  %v1731_v53 = vpop.f32.mrf.mxu0 }
 0x19f   :  { %1815 = vst.msk [vmem:[%s4057_s3 + $0x30] sm:$0xff] %vm1808_vm1, %v1730_v29  ;;  %v2176_v60 = vadd.f32 %v2175_v5, %v2174_v50 }
 0x1a0   :  { %v2177_v25 = vpop.f32.mrf.mxu1  ;;  %v1732_v61 = vpop.f32.mrf.mxu0 }
 0x1a1   :  { %v1733_v45 = vadd.f32 %v1732_v61, %v1596_v33  ;;  %v1601_v4 = vadd.f32 %v2176_v60, %v3873_v34 }
 0x1a2   :  { %v2178_v48 = vpop.f32.mrf.mxu1  ;;  %v1734_v31 = vpop.f32.mrf.mxu0 }
 0x1a3   :  { %1816 = vst.msk [vmem:[%s4057_s3 + $0x38] sm:$0xff] %vm1808_vm1, %v1733_v45  ;;  %v2179_v15 = vadd.f32 %v2178_v48, %v2177_v25 }
 0x1a4   :  { %v2180_v54 = vpop.f32.mrf.mxu1  ;;  %v1737_v56 = vpop.f32.mrf.mxu0 }
 0x1a5   :  { %v1738_v52 = vadd.f32 %v1737_v56, %v1601_v4  ;;  %v1604_v7 = vadd.f32 %v2179_v15, %v3876_v20 }
 0x1a6   :  { %v2181_v12 = vpop.f32.mrf.mxu1  ;;  %v1739_v0 = vpop.f32.mrf.mxu0 }
 0x1a7   :  { %1817 = vst.msk [vmem:[%s4057_s3 + $0x40] sm:$0xff] %vm1808_vm1, %v1738_v52  ;;  %v2182_v32 = vadd.f32 %v2181_v12, %v2180_v54 }
 0x1a8   :  { %v2183_v14 = vpop.f32.mrf.mxu1  ;;  %v1740_v17 = vpop.f32.mrf.mxu0 }
 0x1a9   :  { %v1741_v1 = vadd.f32 %v1740_v17, %v1604_v7  ;;  %v1609_v62 = vadd.f32 %v2182_v32, %v3879_v28 }
 0x1aa   :  { %v2184_v26 = vpop.f32.mrf.mxu1  ;;  %v1742_v10 = vpop.f32.mrf.mxu0 }
 0x1ab   :  { %1818 = vst.msk [vmem:[%s4057_s3 + $0x48] sm:$0xff] %vm1808_vm1, %v1741_v1  ;;  %v2185_v34 = vadd.f32 %v2184_v26, %v2183_v14 }
 0x1ac   :  { %v2186_v21 = vpop.f32.mrf.mxu1  ;;  %v1745_v24 = vpop.f32.mrf.mxu0 }
 0x1ad   :  { %v1746_v36 = vadd.f32 %v1745_v24, %v1609_v62  ;;  %v1612_v19 = vadd.f32 %v2185_v34, %v3882_v6 }
 0x1ae   :  { %v2187_v22 = vpop.f32.mrf.mxu1  ;;  %v1747_v47 = vpop.f32.mrf.mxu0 }
 0x1af   :  { %1819 = vst.msk [vmem:[%s4057_s3 + $0x50] sm:$0xff] %vm1808_vm1, %v1746_v36  ;;  %v2188_v20 = vadd.f32 %v2187_v22, %v2186_v21 }
 0x1b0   :  { %v2189_v16 = vpop.f32.mrf.mxu1  ;;  %v1748_v30 = vpop.f32.mrf.mxu0 }
 0x1b1   :  { %v1749_v51 = vadd.f32 %v1748_v30, %v1612_v19  ;;  %v1617_v35 = vadd.f32 %v2188_v20, %v3885_v11 }
 0x1b2   :  { %v2190_v46 = vpop.f32.mrf.mxu1  ;;  %v1750_v42 = vpop.f32.mrf.mxu0 }
 0x1b3   :  { %1820 = vst.msk [vmem:[%s4057_s3 + $0x58] sm:$0xff] %vm1808_vm1, %v1749_v51  ;;  %v2191_v28 = vadd.f32 %v2190_v46, %v2189_v16 }
 0x1b4   :  { %v2192_v2 = vpop.f32.mrf.mxu1  ;;  %v1753_v58 = vpop.f32.mrf.mxu0 }
 0x1b5   :  { %v1754_v57 = vadd.f32 %v1753_v58, %v1617_v35  ;;  %v1620_v63 = vadd.f32 %v2191_v28, %v3888_v38 }
 0x1b6   :  { %v2193_v41 = vpop.f32.mrf.mxu1  ;;  %v1755_v9 = vpop.f32.mrf.mxu0 }
 0x1b7   :  { %1821 = vst.msk [vmem:[%s4057_s3 + $0x60] sm:$0xff] %vm1808_vm1, %v1754_v57  ;;  %v2194_v6 = vadd.f32 %v2193_v41, %v2192_v2 }
 0x1b8   :  { %v2195_v59 = vpop.f32.mrf.mxu1  ;;  %v1756_v50 = vpop.f32.mrf.mxu0 }
 0x1b9   :  { %v1757_v23 = vadd.f32 %v1756_v50, %v1620_v63  ;;  %v1625_v53 = vadd.f32 %v2194_v6, %v3891_v44 }
 0x1ba   :  { %v2196_v29 = vpop.f32.mrf.mxu1  ;;  %v1758_v5 = vpop.f32.mrf.mxu0 }
 0x1bb   :  { %1822 = vst.msk [vmem:[%s4057_s3 + $0x68] sm:$0xff] %vm1808_vm1, %v1757_v23  ;;  %v2197_v11 = vadd.f32 %v2196_v29, %v2195_v59 }
 0x1bc   :  { %v2198_v60 = vpop.f32.mrf.mxu1  ;;  %v1761_v33 = vpop.f32.mrf.mxu0 }
 0x1bd   :  { %v1762_v25 = vadd.f32 %v1761_v33, %v1625_v53  ;;  %v1628_v48 = vadd.f32 %v2197_v11, %v3894_v8 }
 0x1be   :  { %v2199_v61 = vpop.f32.mrf.mxu1  ;;  %v1763_v45 = vpop.f32.mrf.mxu0 }
 0x1bf   :  { %1823 = vst.msk [vmem:[%s4057_s3 + $0x70] sm:$0xff] %vm1808_vm1, %v1762_v25  ;;  %v2200_v38 = vadd.f32 %v2199_v61, %v2198_v60 }
 0x1c0   :  { %v2201_v31 = vpop.f32.mrf.mxu1  ;;  %v1764_v15 = vpop.f32.mrf.mxu0 }
 0x1c1   :  { %v1765_v4 = vadd.f32 %v1764_v15, %v1628_v48  ;;  %v1633_v52 = vadd.f32 %v2200_v38, %v3897_v3 }
 0x1c2   :  { %v2202_v54 = vpop.f32.mrf.mxu1  ;;  %v1766_v56 = vpop.f32.mrf.mxu0 }
 0x1c3   :  { %1824 = vst.msk [vmem:[%s4057_s3 + $0x78] sm:$0xff] %vm1808_vm1, %v1765_v4  ;;  %v2203_v44 = vadd.f32 %v2202_v54, %v2201_v31 }
 0x1c4   :  { %v2204_v12 = vpop.f32.mrf.mxu1  ;;  %v1769_v0 = vpop.f32.mrf.mxu0 }
 0x1c5   :  { %v1770_v32 = vadd.f32 %v1769_v0, %v1633_v52  ;;  %v1636_v17 = vadd.f32 %v2203_v44, %v3900_v37 }
 0x1c6   :  { %v2205_v7 = vpop.f32.mrf.mxu1  ;;  %v1771_v14 = vpop.f32.mrf.mxu0 }
 0x1c7   :  { %1825 = vst.msk [vmem:[%s4057_s3 + $0x80] sm:$0xff] %vm1808_vm1, %v1770_v32  ;;  %v2206_v8 = vadd.f32 %v2205_v7, %v2204_v12 }
 0x1c8   :  { %v2207_v1 = vpop.f32.mrf.mxu1  ;;  %v1772_v26 = vpop.f32.mrf.mxu0 }
 0x1c9   :  { %v1773_v10 = vadd.f32 %v1772_v26, %v1636_v17  ;;  %v1641_v21 = vadd.f32 %v2206_v8, %v3903_v40 }
 0x1ca   :  { %v2208_v34 = vpop.f32.mrf.mxu1  ;;  %v1774_v62 = vpop.f32.mrf.mxu0 }
 0x1cb   :  { %1826 = vst.msk [vmem:[%s4057_s3 + $0x88] sm:$0xff] %vm1808_vm1, %v1773_v10  ;;  %v2209_v3 = vadd.f32 %v2208_v34, %v2207_v1 }
 0x1cc   :  { %v2210_v24 = vpop.f32.mrf.mxu1  ;;  %v1777_v36 = vpop.f32.mrf.mxu0 }
 0x1cd   :  { %v1778_v22 = vadd.f32 %v1777_v36, %v1641_v21  ;;  %v1644_v19 = vadd.f32 %v2209_v3, %v3906_v49 }
 0x1ce   :  { %v2211_v47 = vpop.f32.mrf.mxu1  ;;  %v1779_v20 = vpop.f32.mrf.mxu0 }
 0x1cf   :  { %1827 = vst.msk [vmem:[%s4057_s3 + $0x90] sm:$0xff] %vm1808_vm1, %v1778_v22  ;;  %v2212_v37 = vadd.f32 %v2211_v47, %v2210_v24 }
 0x1d0   :  { %v2213_v16 = vpop.f32.mrf.mxu1  ;;  %v1780_v30 = vpop.f32.mrf.mxu0 }
 0x1d1   :  { %v1781_v51 = vadd.f32 %v1780_v30, %v1644_v19  ;;  %v1649_v28 = vadd.f32 %v2212_v37, %v3909_v43 }
 0x1d2   :  { %v2214_v46 = vpop.f32.mrf.mxu1  ;;  %v1782_v42 = vpop.f32.mrf.mxu0 }
 0x1d3   :  { %1828 = vst.msk [vmem:[%s4057_s3 + $0x98] sm:$0xff] %vm1808_vm1, %v1781_v51  ;;  %v2215_v40 = vadd.f32 %v2214_v46, %v2213_v16 }
 0x1d4   :  { %v2216_v35 = vpop.f32.mrf.mxu1  ;;  %v1785_v2 = vpop.f32.mrf.mxu0 }
 0x1d5   :  { %v1786_v58 = vadd.f32 %v1785_v2, %v1649_v28  ;;  %v1652_v9 = vadd.f32 %v2215_v40, %v3912_v55 }
 0x1d6   :  { %v2217_v57 = vpop.f32.mrf.mxu1  ;;  %v1787_v41 = vpop.f32.mrf.mxu0 }
 0x1d7   :  { %1829 = vst.msk [vmem:[%s4057_s3 + $0xa0] sm:$0xff] %vm1808_vm1, %v1786_v58  ;;  %v2218_v49 = vadd.f32 %v2217_v57, %v2216_v35 }
 0x1d8   :  { %v2219_v6 = vpop.f32.mrf.mxu1  ;;  %v1788_v63 = vpop.f32.mrf.mxu0 }
 0x1d9   :  { %v1789_v59 = vadd.f32 %v1788_v63, %v1652_v9  ;;  %v1657_v29 = vadd.f32 %v2218_v49, %v3915_v18 }
 0x1da   :  { %v2220_v50 = vpop.f32.mrf.mxu1  ;;  %v1790_v23 = vpop.f32.mrf.mxu0 }
 0x1db   :  { %1830 = vst.msk [vmem:[%s4057_s3 + $0xa8] sm:$0xff] %vm1808_vm1, %v1789_v59  ;;  %v2221_v43 = vadd.f32 %v2220_v50, %v2219_v6 }
 0x1dc   :  { %v2222_v5 = vpop.f32.mrf.mxu1  ;;  %v1793_v11 = vpop.f32.mrf.mxu0 }
 0x1dd   :  { %v1794_v53 = vadd.f32 %v1793_v11, %v1657_v29  ;;  %v1660_v25 = vadd.f32 %v2221_v43, %v3918_v13 }
 0x1de   :  { %v2223_v60 = vpop.f32.mrf.mxu1  ;;  %v1795_v33 = vpop.f32.mrf.mxu0 }
 0x1df   :  { %1831 = vst.msk [vmem:[%s4057_s3 + $0xb0] sm:$0xff] %vm1808_vm1, %v1794_v53  ;;  %v2224_v55 = vadd.f32 %v2223_v60, %v2222_v5 }
 0x1e0   :  { %v2225_v61 = vpop.f32.mrf.mxu1  ;;  %v1796_v45 = vpop.f32.mrf.mxu0 }
 0x1e1   :  { %v1797_v38 = vadd.f32 %v1796_v45, %v1660_v25  ;;  %v1665_v15 = vadd.f32 %v2224_v55, %v3920_v39 }
 0x1e2   :  { %v2226_v48 = vpop.f32.mrf.mxu1  ;;  %v1798_v31 = vpop.f32.mrf.mxu0 }
 0x1e3   :  { %1832 = vst.msk [vmem:[%s4057_s3 + $0xb8] sm:$0xff] %vm1808_vm1, %v1797_v38  ;;  %v2227_v18 = vadd.f32 %v2226_v48, %v2225_v61 }
 0x1e4   :  { %v1801_v4 = vpop.f32.mrf.mxu0 }
 0x1e5   :  { %v1802_v54 = vadd.f32 %v1801_v4, %v1665_v15  ;;  %v1668_v13 = vadd.f32 %v2227_v18, %v3923_v27 }
 0x1e6   :  { %v1803_v56 = vpop.f32.mrf.mxu0 }
 0x1e7   :  { %1833 = vst.msk [vmem:[%s4057_s3 + $0xc0] sm:$0xff] %vm1808_vm1, %v1802_v54 }
 0x1e8   :  { %v1804_v44 = vpop.f32.mrf.mxu0 }
 0x1e9   :  { %v1805_v52 = vadd.f32 %v1804_v44, %v1668_v13 }
 0x1ea   :  { %v1806_v12 = vpop.f32.mrf.mxu0 }
 0x1eb   :  { %1834 = vst.msk [vmem:[%s4057_s3 + $0xc8] sm:$0xff] %vm1808_vm1, %v1805_v52 }

</bundles_post_ra>
